<compile_context>
chip_gen: v6e
topology: v6e:2x2x1
jax: 0.10.0
libtpu: 0.0.40
codegen_flags: <defaults>
</compile_context>

<pallas_src>
import functools
import math

import jax
import jax.numpy as jnp
from jax.experimental import pallas as pl
from jax.experimental.pallas import tpu as pltpu


_MASK_VALUE = -1.0e6   # reference's masked-fill value (keeps uniform-softmax semantics)
_PAD_VALUE = -1.0e30   # padded key columns -> exactly zero softmax weight


def _round_up(x, m):
    return ((x + m - 1) // m) * m


def _attn_kernel(vl_ref, q_ref, k_ref, v_ref, o_ref,
                 m_sc, l_sc, acc_sc, *, scale, k_orig):
    b = pl.program_id(0)
    ki = pl.program_id(2)
    nk = pl.num_programs(2)

    @pl.when(ki == 0)
    def _init():
        m_sc[...] = jnp.full_like(m_sc, -jnp.inf)
        l_sc[...] = jnp.zeros_like(l_sc)
        acc_sc[...] = jnp.zeros_like(acc_sc)

    # Fold 1/sqrt(d) into the (small) Q tile instead of scaling (Q, K) scores.
    q = q_ref[...] * jnp.float32(scale)          # (TQ, dP)
    k = k_ref[...]                               # (TK, dP)

    # scores = Q @ K^T, contracting on d directly (no materialized transpose).
    s = jax.lax.dot_general(q, k, (((1,), (1,)), ((), ())),
                            preferred_element_type=jnp.float32)   # (TQ, TK)

    # masked_softmax masking (reference uses -1e6, not -inf); padding columns
    # (beyond the original K) are pushed far lower so they weight to zero.
    vl = vl_ref[b]                               # scalar int32 from SMEM
    tk = s.shape[1]
    col = ki * tk + jax.lax.broadcasted_iota(jnp.int32, s.shape, 1)
    s = jnp.where(col < vl, s, jnp.float32(_MASK_VALUE))
    s = jnp.where(col < k_orig, s, jnp.float32(_PAD_VALUE))

    # Online softmax update.
    m_prev = m_sc[...]
    m_new = jnp.maximum(m_prev, jnp.max(s, axis=-1, keepdims=True))
    alpha = jnp.exp(m_prev - m_new)              # 0 at init (exp(-inf))
    p = jnp.exp(s - m_new)                       # (TQ, TK), f32
    l_sc[...] = alpha * l_sc[...] + jnp.sum(p, axis=-1, keepdims=True)
    acc_sc[...] = alpha * acc_sc[...] + jnp.dot(
        p, v_ref[...], preferred_element_type=jnp.float32)
    m_sc[...] = m_new

    @pl.when(ki == nk - 1)
    def _finalize():
        l = l_sc[...]
        r = pl.reciprocal(l, approx=True)
        r = r * (2.0 - l * r)                    # one Newton step -> ~f32 accuracy
        o_ref[...] = (acc_sc[...] * r).astype(o_ref.dtype)


def dot_product_attention(queries, keys, values, valid_lens=None,
                          *, block_q=256, block_k=256):
    """queries (B,Q,d), keys (B,K,d), values (B,K,dv), valid_lens (B,) or None."""
    B, Q, d = queries.shape
    _, K, _ = keys.shape
    dv = values.shape[-1]

    # 128-aligned, lane-dense tiles (pad with zeros; zeros don't change Q.K^T,
    # padded output columns/rows are sliced off at the end).
    d_pad = _round_up(d, 128)
    dv_pad = _round_up(dv, 128)
    tq = min(block_q, _round_up(Q, 128))
    tk = min(block_k, _round_up(K, 128))
    q_pad = _round_up(Q, tq)
    k_pad = _round_up(K, tk)

    qp = jnp.pad(queries, ((0, 0), (0, q_pad - Q), (0, d_pad - d)))
    kp = jnp.pad(keys, ((0, 0), (0, k_pad - K), (0, d_pad - d)))
    vp = jnp.pad(values, ((0, 0), (0, k_pad - K), (0, dv_pad - dv)))

    if valid_lens is None:
        # No masking: col < K is always true -> plain softmax (exact match).
        vl = jnp.full((B,), K, dtype=jnp.int32)
    else:
        vl = valid_lens.astype(jnp.int32)

    grid = (B, q_pad // tq, k_pad // tk)

    grid_spec = pltpu.PrefetchScalarGridSpec(
        num_scalar_prefetch=1,          # valid_lens lives in SMEM
        grid=grid,
        in_specs=[
            pl.BlockSpec((pl.Squeezed(), tq, d_pad),
                         lambda b, qi, ki, vl_ref: (b, qi, 0)),
            pl.BlockSpec((pl.Squeezed(), tk, d_pad),
                         lambda b, qi, ki, vl_ref: (b, ki, 0)),
            pl.BlockSpec((pl.Squeezed(), tk, dv_pad),
                         lambda b, qi, ki, vl_ref: (b, ki, 0)),
        ],
        out_specs=pl.BlockSpec((pl.Squeezed(), tq, dv_pad),
                               lambda b, qi, ki, vl_ref: (b, qi, 0)),
        scratch_shapes=[
            pltpu.VMEM((tq, 1), jnp.float32),       # running max
            pltpu.VMEM((tq, 1), jnp.float32),       # running sum
            pltpu.VMEM((tq, dv_pad), jnp.float32),  # output accumulator
        ],
    )

    kernel = functools.partial(_attn_kernel, scale=1.0 / math.sqrt(d), k_orig=K)

    out_padded = pl.pallas_call(
        kernel,
        out_shape=jax.ShapeDtypeStruct((B, q_pad, dv_pad), queries.dtype),
        grid_spec=grid_spec,
        compiler_params=pltpu.CompilerParams(
            dimension_semantics=("parallel", "parallel", "arbitrary"),
            vmem_limit_bytes=32 * 1024 * 1024,
        ),
        cost_estimate=pl.CostEstimate(
            flops=2 * B * q_pad * k_pad * (d_pad + dv_pad),
            transcendentals=B * q_pad * k_pad,
            bytes_accessed=4 * B * (q_pad * d_pad + k_pad * d_pad
                                    + k_pad * dv_pad + q_pad * dv_pad),
        ),
    )(vl, qp, kp, vp)

    return out_padded[:, :Q, :dv]


def _reference(queries, keys, values, valid_lens):
    """Pure-JAX mirror of the PyTorch forward (eval mode)."""
    d = queries.shape[-1]
    scores = jnp.einsum("bqd,bkd->bqk", queries, keys) / math.sqrt(d)
    if valid_lens is not None:
        col = jnp.arange(scores.shape[-1])[None, None, :]
        mask = col < valid_lens[:, None, None]
        scores = jnp.where(mask, scores, -1000000.0)
    w = jax.nn.softmax(scores, axis=-1)
    return jnp.einsum("bqk,bkv->bqv", w, values)


if __name__ == "__main__":
    key = jax.random.PRNGKey(0)
    kq, kk, kv = jax.random.split(key, 3)

    # --- small test, matches the PyTorch module's typical usage ---
    B, Q, K, d, dv = 2, 8, 8, 32, 32
    queries = jax.random.normal(kq, (B, Q, d), dtype=jnp.float32)
    keys = jax.random.normal(kk, (B, K, d), dtype=jnp.float32)
    values = jax.random.normal(kv, (B, K, dv), dtype=jnp.float32)
    valid_lens = jnp.array([3, 6], dtype=jnp.int32)

    out = jax.block_until_ready(dot_product_attention(queries, keys, values, valid_lens))
    ref = _reference(queries, keys, values, valid_lens)
    assert out.shape == (B, Q, dv)
    assert jnp.allclose(out, ref, atol=5e-5, rtol=5e-5), "mismatch vs reference"

    # valid_lens=None path (plain softmax).
    out2 = jax.block_until_ready(dot_product_attention(queries, keys, values, None))
    ref2 = _reference(queries, keys, values, None)
    assert jnp.allclose(out2, ref2, atol=5e-5, rtol=5e-5), "mismatch (no mask)"

    # --- multi-K-tile test: exercises online softmax across K tiles and the
    #     fully-masked (valid_len=0 -> uniform weights) corner case ---
    k2q, k2k, k2v = jax.random.split(jax.random.PRNGKey(1), 3)
    B2, Q2, K2 = 2, 16, 256
    q2 = jax.random.normal(k2q, (B2, Q2, d), dtype=jnp.float32)
    kk2 = jax.random.normal(k2k, (B2, K2, d), dtype=jnp.float32)
    v2 = jax.random.normal(k2v, (B2, K2, dv), dtype=jnp.float32)
    vl2 = jnp.array([100, 0], dtype=jnp.int32)

    out3 = jax.block_until_ready(
        dot_product_attention(q2, kk2, v2, vl2, block_q=128, block_k=128))
    ref3 = _reference(q2, kk2, v2, vl2)
    assert jnp.allclose(out3, ref3, atol=5e-5, rtol=5e-5), "mismatch (tiled K)"

    print("KERNEL_OK")
</pallas_src>

<mosaic_0001>
module attributes {stable_mosaic.version = 11 : i64} {
  func.func @_attn_kernel(%arg0: i32, %arg1: i32, %arg2: i32, %arg3: memref<2xi32, #tpu.memory_space<smem>>, %arg4: memref<1x128x128xf32, #tpu.memory_space<vmem>>, %arg5: memref<1x128x128xf32, #tpu.memory_space<vmem>>, %arg6: memref<1x128x128xf32, #tpu.memory_space<vmem>>, %arg7: memref<1x128x128xf32, #tpu.memory_space<vmem>>, %arg8: memref<128x1xf32, #tpu.memory_space<vmem>>, %arg9: memref<128x1xf32, #tpu.memory_space<vmem>>, %arg10: memref<128x128xf32, #tpu.memory_space<vmem>>) attributes {dimension_semantics = [#tpu.dimension_semantics<parallel>, #tpu.dimension_semantics<parallel>, #tpu.dimension_semantics<arbitrary>], iteration_bounds = array<i64: 2, 1, 1>, scalar_prefetch = 1 : i64, scratch_operands = 3 : i64, tpu.core_type = #tpu.core_type<tc>, window_params = [{transform_indices = @transform_0, window_bounds = array<i64: 1, 128, 128>}, {transform_indices = @transform_1, window_bounds = array<i64: 1, 128, 128>}, {transform_indices = @transform_2, window_bounds = array<i64: 1, 128, 128>}, {transform_indices = @transform_3, window_bounds = array<i64: 1, 128, 128>}]} {
    %c0_i32 = arith.constant 0 : i32
    %0 = arith.cmpi eq, %arg2, %c0_i32 : i32
    %1 = arith.extui %0 : i1 to i32
    %c0_i32_0 = arith.constant 0 : i32
    %2 = arith.cmpi ne, %1, %c0_i32_0 : i32
    scf.if %2 {
      %cst_29 = arith.constant 0xFF800000 : f32
      %51 = vector.broadcast %cst_29 : f32 to vector<128x1xf32>
      %c0_30 = arith.constant 0 : index
      %c0_31 = arith.constant 0 : index
      %52 = vector.load %arg8[%c0_30, %c0_31] : memref<128x1xf32, #tpu.memory_space<vmem>>, vector<128x1xf32>
      tpu.vector_store %arg8[%c0_30, %c0_31], %51 {strides = array<i32>} : memref<128x1xf32, #tpu.memory_space<vmem>>, vector<128x1xf32>,
      %cst_32 = arith.constant 0.000000e+00 : f32
      %53 = vector.broadcast %cst_32 : f32 to vector<128x1xf32>
      %c0_33 = arith.constant 0 : index
      %c0_34 = arith.constant 0 : index
      %54 = vector.load %arg9[%c0_33, %c0_34] : memref<128x1xf32, #tpu.memory_space<vmem>>, vector<128x1xf32>
      tpu.vector_store %arg9[%c0_33, %c0_34], %53 {strides = array<i32>} : memref<128x1xf32, #tpu.memory_space<vmem>>, vector<128x1xf32>,
      %cst_35 = arith.constant 0.000000e+00 : f32
      %55 = vector.broadcast %cst_35 : f32 to vector<128x128xf32>
      %c0_36 = arith.constant 0 : index
      %c0_37 = arith.constant 0 : index
      %56 = vector.load %arg10[%c0_36, %c0_37] : memref<128x128xf32, #tpu.memory_space<vmem>>, vector<128x128xf32>
      tpu.vector_store %arg10[%c0_36, %c0_37], %55 {strides = array<i32>} : memref<128x128xf32, #tpu.memory_space<vmem>>, vector<128x128xf32>,
    } else {
    }
    %c0 = arith.constant 0 : index
    %c0_1 = arith.constant 0 : index
    %c0_2 = arith.constant 0 : index
    %3 = vector.load %arg4[%c0, %c0_1, %c0_2] : memref<1x128x128xf32, #tpu.memory_space<vmem>>, vector<1x128x128xf32>
    %4 = vector.shape_cast %3 : vector<1x128x128xf32> to vector<128x128xf32>
    %cst = arith.constant 0.176776692 : f32
    %5 = vector.broadcast %cst : f32 to vector<128x128xf32>
    %6 = arith.mulf %4, %5 : vector<128x128xf32>
    %c0_3 = arith.constant 0 : index
    %c0_4 = arith.constant 0 : index
    %c0_5 = arith.constant 0 : index
    %7 = vector.load %arg5[%c0_3, %c0_4, %c0_5] : memref<1x128x128xf32, #tpu.memory_space<vmem>>, vector<1x128x128xf32>
    %8 = vector.shape_cast %7 : vector<1x128x128xf32> to vector<128x128xf32>
    %cst_6 = arith.constant dense<0.000000e+00> : vector<128x128xf32>
    %9 = tpu.matmul %6, %8, %cst_6 {dimension_numbers = #tpu.dot_dimension_numbers<[1], [1], [0], [0], [0, 0, 1, 0], [], []>} : vector<128x128xf32>, vector<128x128xf32>, vector<128x128xf32> -> vector<128x128xf32>
    %10 = arith.index_cast %arg0 : i32 to index
    %11 = memref.load %arg3[%10] : memref<2xi32, #tpu.memory_space<smem>>
    %c128_i32 = arith.constant 128 : i32
    %12 = arith.muli %arg2, %c128_i32 : i32
    %13 = tpu.iota {dimensions = array<i32: 1>} : vector<128x128xi32>
    %14 = vector.broadcast %12 : i32 to vector<128x128xi32>
    %15 = arith.addi %14, %13 : vector<128x128xi32>
    %16 = vector.broadcast %11 : i32 to vector<128x128xi32>
    %17 = arith.cmpi slt, %15, %16 : vector<128x128xi32>
    %cst_7 = arith.constant -1.000000e+06 : f32
    %18 = vector.broadcast %cst_7 : f32 to vector<128x128xf32>
    %19 = arith.select %17, %9, %18 : vector<128x128xi1>, vector<128x128xf32>
    %c8_i32 = arith.constant 8 : i32
    %20 = vector.broadcast %c8_i32 : i32 to vector<128x128xi32>
    %21 = arith.cmpi slt, %15, %20 : vector<128x128xi32>
    %cst_8 = arith.constant -1.000000e+30 : f32
    %22 = vector.broadcast %cst_8 : f32 to vector<128x128xf32>
    %23 = arith.select %21, %19, %22 : vector<128x128xi1>, vector<128x128xf32>
    %c0_9 = arith.constant 0 : index
    %c0_10 = arith.constant 0 : index
    %24 = vector.load %arg8[%c0_9, %c0_10] : memref<128x1xf32, #tpu.memory_space<vmem>>, vector<128x1xf32>
    %cst_11 = arith.constant dense<0xFF800000> : vector<128xf32>
    %25 = vector.multi_reduction <maximumf>, %23, %cst_11 [1] : vector<128x128xf32> to vector<128xf32>
    %26 = vector.shape_cast %25 : vector<128xf32> to vector<128x1xf32>
    %27 = arith.maximumf %24, %26 : vector<128x1xf32>
    %28 = arith.subf %24, %27 : vector<128x1xf32>
    %29 = math.exp %28 : vector<128x1xf32>
    %30 = vector.broadcast %27 : vector<128x1xf32> to vector<128x128xf32>
    %31 = arith.subf %23, %30 : vector<128x128xf32>
    %32 = math.exp %31 : vector<128x128xf32>
    %c0_12 = arith.constant 0 : index
    %c0_13 = arith.constant 0 : index
    %33 = vector.load %arg9[%c0_12, %c0_13] : memref<128x1xf32, #tpu.memory_space<vmem>>, vector<128x1xf32>
    %34 = arith.mulf %29, %33 : vector<128x1xf32>
    %cst_14 = arith.constant dense<0.000000e+00> : vector<128xf32>
    %35 = vector.multi_reduction <add>, %32, %cst_14 [1] : vector<128x128xf32> to vector<128xf32>
    %36 = vector.shape_cast %35 : vector<128xf32> to vector<128x1xf32>
    %37 = arith.addf %34, %36 : vector<128x1xf32>
    %c0_15 = arith.constant 0 : index
    %c0_16 = arith.constant 0 : index
    %38 = vector.load %arg9[%c0_15, %c0_16] : memref<128x1xf32, #tpu.memory_space<vmem>>, vector<128x1xf32>
    tpu.vector_store %arg9[%c0_15, %c0_16], %37 {strides = array<i32>} : memref<128x1xf32, #tpu.memory_space<vmem>>, vector<128x1xf32>,
    %c0_17 = arith.constant 0 : index
    %c0_18 = arith.constant 0 : index
    %39 = vector.load %arg10[%c0_17, %c0_18] : memref<128x128xf32, #tpu.memory_space<vmem>>, vector<128x128xf32>
    %40 = vector.broadcast %29 : vector<128x1xf32> to vector<128x128xf32>
    %41 = arith.mulf %40, %39 : vector<128x128xf32>
    %c0_19 = arith.constant 0 : index
    %c0_20 = arith.constant 0 : index
    %c0_21 = arith.constant 0 : index
    %42 = vector.load %arg6[%c0_19, %c0_20, %c0_21] : memref<1x128x128xf32, #tpu.memory_space<vmem>>, vector<1x128x128xf32>
    %43 = vector.shape_cast %42 : vector<1x128x128xf32> to vector<128x128xf32>
    %cst_22 = arith.constant dense<0.000000e+00> : vector<128x128xf32>
    %44 = tpu.matmul %32, %43, %cst_22 {dimension_numbers = #tpu.dot_dimension_numbers<[1], [0], [0], [1], [0, 0, 1, 1], [], []>} : vector<128x128xf32>, vector<128x128xf32>, vector<128x128xf32> -> vector<128x128xf32>
    %45 = arith.addf %41, %44 : vector<128x128xf32>
    %c0_23 = arith.constant 0 : index
    %c0_24 = arith.constant 0 : index
    %46 = vector.load %arg10[%c0_23, %c0_24] : memref<128x128xf32, #tpu.memory_space<vmem>>, vector<128x128xf32>
    tpu.vector_store %arg10[%c0_23, %c0_24], %45 {strides = array<i32>} : memref<128x128xf32, #tpu.memory_space<vmem>>, vector<128x128xf32>,
    %c0_25 = arith.constant 0 : index
    %c0_26 = arith.constant 0 : index
    %47 = vector.load %arg8[%c0_25, %c0_26] : memref<128x1xf32, #tpu.memory_space<vmem>>, vector<128x1xf32>
    tpu.vector_store %arg8[%c0_25, %c0_26], %27 {strides = array<i32>} : memref<128x1xf32, #tpu.memory_space<vmem>>, vector<128x1xf32>,
    %c0_i32_27 = arith.constant 0 : i32
    %48 = arith.cmpi eq, %arg2, %c0_i32_27 : i32
    %49 = arith.extui %48 : i1 to i32
    %c0_i32_28 = arith.constant 0 : i32
    %50 = arith.cmpi ne, %49, %c0_i32_28 : i32
    scf.if %50 {
      %c0_29 = arith.constant 0 : index
      %c0_30 = arith.constant 0 : index
      %51 = vector.load %arg9[%c0_29, %c0_30] : memref<128x1xf32, #tpu.memory_space<vmem>>, vector<128x1xf32>
      %52 = tpu.reciprocal %51 {approx = true} : vector<128x1xf32> -> vector<128x1xf32>
      %53 = arith.mulf %51, %52 : vector<128x1xf32>
      %cst_31 = arith.constant 2.000000e+00 : f32
      %54 = vector.broadcast %cst_31 : f32 to vector<128x1xf32>
      %55 = arith.subf %54, %53 : vector<128x1xf32>
      %56 = arith.mulf %52, %55 : vector<128x1xf32>
      %c0_32 = arith.constant 0 : index
      %c0_33 = arith.constant 0 : index
      %57 = vector.load %arg10[%c0_32, %c0_33] : memref<128x128xf32, #tpu.memory_space<vmem>>, vector<128x128xf32>
      %58 = vector.broadcast %56 : vector<128x1xf32> to vector<128x128xf32>
      %59 = arith.mulf %57, %58 : vector<128x128xf32>
      %c0_34 = arith.constant 0 : index
      %c0_35 = arith.constant 0 : index
      %c0_36 = arith.constant 0 : index
      %60 = vector.load %arg7[%c0_34, %c0_35, %c0_36] : memref<1x128x128xf32, #tpu.memory_space<vmem>>, vector<1x128x128xf32>
      %61 = vector.shape_cast %60 : vector<1x128x128xf32> to vector<128x128xf32>
      %62 = vector.shape_cast %59 : vector<128x128xf32> to vector<1x128x128xf32>
      tpu.vector_store %arg7[%c0_34, %c0_35, %c0_36], %62 {strides = array<i32>} : memref<1x128x128xf32, #tpu.memory_space<vmem>>, vector<1x128x128xf32>,
    } else {
    }
    return
  }
  func.func @transform_0(%arg0: i32, %arg1: i32, %arg2: i32, %arg3: memref<2xi32, #tpu.memory_space<smem>>) -> (i32, i32, i32) {
    %c0_i32 = arith.constant 0 : i32
    %c0_i32_0 = arith.constant 0 : i32
    return %arg0, %arg1, %c0_i32 : i32, i32, i32
  }
  func.func @transform_1(%arg0: i32, %arg1: i32, %arg2: i32, %arg3: memref<2xi32, #tpu.memory_space<smem>>) -> (i32, i32, i32) {
    %c0_i32 = arith.constant 0 : i32
    %c0_i32_0 = arith.constant 0 : i32
    return %arg0, %arg2, %c0_i32 : i32, i32, i32
  }
  func.func @transform_2(%arg0: i32, %arg1: i32, %arg2: i32, %arg3: memref<2xi32, #tpu.memory_space<smem>>) -> (i32, i32, i32) {
    %c0_i32 = arith.constant 0 : i32
    %c0_i32_0 = arith.constant 0 : i32
    return %arg0, %arg2, %c0_i32 : i32, i32, i32
  }
  func.func @transform_3(%arg0: i32, %arg1: i32, %arg2: i32, %arg3: memref<2xi32, #tpu.memory_space<smem>>) -> (i32, i32, i32) {
    %c0_i32 = arith.constant 0 : i32
    %c0_i32_0 = arith.constant 0 : i32
    return %arg0, %arg1, %c0_i32 : i32, i32, i32
  }
}

</mosaic_0001>

<bundles_post_ra>
// kernel: tpu_custom_call.1
= control target key start
LH: loop header
LB: loop body
LE: loop exit
PB: predicated region body
PF: predicated region fallthrough
CT: control target
= control target key end

     0   :  { %s2180_s15 = smov [#allocation6]   ;;  %s2970_s0 = inlined_call_operand.hbm [shape: s32[2], index: 0, kind: input, shape index: {}]   ;;  %s2971_s1 = inlined_call_operand.hbm [shape: f32[2,128,128], index: 1, kind: input, shape index: {}]   ;;  %s2972_s2 = inlined_call_operand.hbm [shape: f32[2,128,128], index: 2, kind: input, shape index: {}]   ;;  %s2973_s3 = inlined_call_operand.hbm [shape: f32[2,128,128], index: 3, kind: input, shape index: {}]   ;;  %s2974_s4 = inlined_call_operand.hbm [shape: f32[2,128,128], index: 4, kind: output, shape index: {}]  }
   0x1   :  { %2980 = sst [smem:[#allocation21_spill]] %s2972_s2 }
   0x2   :  { %10 = dma.hbm_to_smem %s2970_s0, 16, %s2180_s15, [#allocation5] }
   0x3   :  { %2142 = dma.done.wait [#allocation5], 16 }
   0x4   :  { %2143 = vsyncadd [#allocation5], 4294967280 }
   0x5   :  { %12 = sfence }
   0x6   :  { %13 = vsyncpa [#allocation8], 0 }
   0x7   :  { %15 = vsyncpa [#allocation8 + $0x1], 0 }
   0x8   :  { %16 = vsyncpa [#allocation11], 0 }
   0x9   :  { %18 = vsyncpa [#allocation11 + $0x1], 0 }
   0xa   :  { %19 = vsyncpa [#allocation9], 0 }
   0xb   :  { %21 = vsyncpa [#allocation9 + $0x1], 0  ;;  %s2220_s18 = smov 0   ;;  %s2222_s19 = smov 0  }
   0xc   :  { %s2224_s20 = smov 0   ;;  %s2226_s21 = smov 0  }
   0xd   :  { %s2228_s22 = smov 0   ;;  %s2230_s0 = smov 0  }
   0xe LB: > { %2981 = sst [smem:[#allocation18_spill]] %s2174_s22  ;;  %s2251_s23 = sadd.s32 4294967295, %s2178_s0   ;;  %s2178_s0 = sphi %s2230_s0, %s27_s0   ;;  %s2174_s22 = sphi %s2228_s22, %s3011_s22   ;;  %s2170_s21 = sphi %s2226_s21, %s3010_s21   ;;  %s2166_s20 = sphi %s2224_s20, %s3014_s20   ;;  %s2162_s19 = sphi %s2222_s19, %s3013_s19   ;;  %s2158_s18 = sphi %s2220_s18, %s3012_s18  }
   0xf   : > { %s1620_s24 = sadd.s32 4294967294, %s2178_s0   ;;  %s46_s25 = sadd.s32 1, %s2174_s22 }
  0x10   : > { %s55_s26 = sadd.s32 1, %s2166_s20  ;;  %p48_p0 = scmp.ge.s32.totalorder %s46_s25, 2 }
  0x11   : > { %p62_p1 = scmp.ne.s32.totalorder %s2166_s20, %s2162_s19  ;;  %p63_p2 = scmp.eq.s32.totalorder %s2178_s0, 0 }
  0x12   : > { %p68_p3 = scmp.ne.s32.totalorder %s2162_s19, %s2158_s18  ;;  %s3016_s25 = smov (%p48_p0, %s46_s25), 0 }
  0x13   : > { %2982 = sst [smem:[#allocation19_spill]] %s3016_s25  ;;  %p2263_p4 = por %p63_p2, %p62_p1 }
  0x14   : > { %p69_p5 = scmp.eq.s32.totalorder %s2251_s23, 0  ;;  %s50_s28 = ssub.s32 %s2174_s22, %s3016_s25 }
  0x15   : > { %p150_p6 = scmp.eq.s32.totalorder %s2251_s23, 1  ;;  %p53_p7 = scmp.eq.s32.totalorder %s50_s28, 0 }
  0x16   : > { %p2271_p8 = por %p69_p5, %p68_p3  ;;  %p156_p10 = scmp.eq.s32.totalorder %s1620_s24, 1 }
  0x17   : > { %p2275_p9 = por %p150_p6, %p62_p1  ;;  %p1844_p13 = scmp.lt.s32.totalorder %s2178_s0, 2 }
  0x18   : > { %s2280_s5 = scalar_select %p53_p7, %s2166_s20, %s55_s26  }
  0x19   : > { %p2282_p11 = por %p156_p10, %p68_p3  ;;  %s2975_s7 = sand.u32 1, %s2166_s20  }
  0x1a   : > { %2986 = sst [smem:[#allocation20_spill]] %s2280_s5  ;;  %s2291_s8 = sshll.u32 %s2975_s7, 7 }
  0x1b   : > { %s2294_s9 = sshll.u32 %s2174_s22, 11  ;;  %p2298_p0 = pnand %p1844_p13, %p2263_p4 }
  0x1c   : > { %s199_s11 = sand.u32 1, %s2178_s0   ;;  %s2989_s2 = sld [smem:[#allocation21_spill]] }
  0x1d   : > { %s203_s15 = scalar_lea.vmem [#allocation10], %s2291_s8  ;;  %p1632_p1 = scmp.ge.s32.totalorder %s2178_s0, 1 }
  0x1e   : > { %s212_s16 = sshll.u32 %s203_s15, 4  ;;  %p243_p2 = scmp.lt.s32.totalorder %s2178_s0, 3  ;;  %s213_s16 = int_to_ptr.vmem [resolvable:$true] %s212_s16 }
  0x1f   : > { %s2310_s17 = scalar_lea.sflag [#allocation11], %s199_s11  ;;  %p2010_p3 = pneg %p2298_p0 }
  0x20   : > { %s2021_s24 = scalar_lea.vmem %s213_s16, 2048  ;;  %s2181_s26 = smov [#allocation10]  }
  0x21   : > { %p2022_p4 = scmp.ne.s32.totalorder %s213_s16, %s2021_s24  ;;  %s2026_s27 = sshll.u32 %s2181_s26, 4  ;;  %s2027_s27 = int_to_ptr.vmem [resolvable:$false] %s2026_s27 }
  0x22   : > { %s211_s14 = scalar_lea.hbm %s2989_s2, %s2294_s9  ;;  %s2028_s28 = scalar_lea.vmem %s2027_s27, 4096 }
  0x23   : > { %p2024_p5 = pnand %p2022_p4, %p2010_p3  ;;  %p2029_p7 = scmp.lt.s32.totalorder %s213_s16, %s2027_s27 }
  0x24   : > { %p2030_p10 = scmp.lt.s32.totalorder %s2028_s28, %s2021_s24 }
  0x25   : > { %p2025_p6 = pneg %p2024_p5 }
  0x26   : > { %p2031_p13 = por %p2030_p10, %p2029_p7 }
  0x28   : > { %p2032_p12 = pnand %p2031_p13, %p2025_p6 }
  0x2a   : > { %2035 = shalt.err (!%p2032_p12)
}
  0x2b   : > { %s2978_s12 = smov 128   ;;  %s2183_s11 = smov 8  }
  0x2c   : > { %1836 = dma.hbm_to_vmem [thread:$0]  (!%p2298_p0), %s211_s14, 2048, %s213_s16, %s2310_s17, %s2978_s12, %s2978_s12, %s2183_s11  }
  0x2d   : > { %p2327_p4 = pnand %p1632_p1, %p243_p2  ;;  %s188_s26 = scalar_lea.hbm %s2971_s1, %s2294_s9 }
  0x2e   : > { %s180_s27 = scalar_lea.vmem [#allocation7], %s2291_s8  ;;  %s234_s25 = scalar_lea.hbm %s2973_s3, %s2294_s9 }
  0x2f   : > { %s189_s28 = sshll.u32 %s180_s27, 4  ;;  %s2991_s22 = sand.u32 1, %s2166_s20   ;;  %s190_s28 = int_to_ptr.vmem [resolvable:$true] %s189_s28 }
  0x30   : > { %s177_s5 = scalar_lea.sflag [#allocation8], %s2991_s22  ;;  %s2049_s14 = scalar_lea.vmem %s190_s28, 2048 }
  0x31   : > { %p2050_p12 = scmp.ne.s32.totalorder %s190_s28, %s2049_s14  ;;  %s2184_s16 = smov [#allocation7]  }
  0x32   : > { %s2054_s12 = sshll.u32 %s2184_s16, 4  ;;  %s2055_s12 = int_to_ptr.vmem [resolvable:$false] %s2054_s12 }
  0x33   : > { %p2052_p1 = pnand %p2050_p12, %p2010_p3  ;;  %s2056_s15 = scalar_lea.vmem %s2055_s12, 4096 }
  0x34   : > { %p2057_p5 = scmp.lt.s32.totalorder %s190_s28, %s2055_s12  ;;  %p2058_p6 = scmp.lt.s32.totalorder %s2056_s15, %s2049_s14 }
  0x35   : > { %p2053_p2 = pneg %p2052_p1 }
  0x36   : > { %p2059_p7 = por %p2058_p6, %p2057_p5 }
  0x38   : > { %p2060_p10 = pnand %p2059_p7, %p2053_p2 }
  0x3a   : > { %2063 = shalt.err (!%p2060_p10)
}
  0x3b   : > { %s2992_s2 = smov 128   ;;  %s226_s22 = scalar_lea.vmem [#allocation12], %s2291_s8 }
  0x3c   : > { %1833 = dma.hbm_to_vmem [thread:$0]  (!%p2298_p0), %s188_s26, 2048, %s190_s28, %s177_s5, %s2992_s2, %s2992_s2, %s2183_s11  }
  0x3d   : > { %s235_s7 = sshll.u32 %s226_s22, 4  ;;  %s2185_s12 = smov [#allocation12]   ;;  %s236_s7 = int_to_ptr.vmem [resolvable:$true] %s235_s7 }
  0x3e   : > { %s2077_s24 = scalar_lea.vmem %s236_s7, 2048  ;;  %s2082_s27 = sshll.u32 %s2185_s12, 4  ;;  %s2083_s27 = int_to_ptr.vmem [resolvable:$false] %s2082_s27 }
  0x3f   : > { %p2078_p13 = scmp.ne.s32.totalorder %s236_s7, %s2077_s24  ;;  %s2084_s14 = scalar_lea.vmem %s2083_s27, 4096 }
  0x40   : > { %p2085_p2 = scmp.lt.s32.totalorder %s236_s7, %s2083_s27  ;;  %p2086_p5 = scmp.lt.s32.totalorder %s2084_s14, %s2077_s24 }
  0x41   : > { %p2080_p12 = pnand %p2078_p13, %p2010_p3 }
  0x42   : > { %p2087_p6 = por %p2086_p5, %p2085_p2 }
  0x43   : > { %p2081_p1 = pneg %p2080_p12 }
  0x45   : > { %p2088_p7 = pnand %p2087_p6, %p2081_p1 }
  0x47   : > { %2091 = shalt.err (!%p2088_p7)
}
  0x48   : > { %1839 = dma.hbm_to_vmem [thread:$0]  (!%p2298_p0), %s234_s25, 2048, %s236_s7, %s2310_s17, %s2992_s2, %s2992_s2, %s2183_s11  }
  0x49   : > { %247 = sbr.rel (%p2327_p4) target bundleno = 978 (0x3d2), region = 32  ;;  %s2368_s26 = sand.u32 (!%p2327_p4), 1, %s2162_s19  }
  0x4a   : > { %s2371_s10 = sshll.u32 (!%p2327_p4), %s2368_s26, 7  ;;  %s250_s28 = scalar_lea.sflag (!%p2327_p4), [#allocation8], %s2368_s26 }
  0x4b   : > { %s2375_s16 = scalar_lea.vmem (!%p2327_p4), [#allocation7], %s2371_s10 }
  0x4e   : > { %2145 = dma.done.wait (%p2271_p8), %s250_s28, 2048  }
  0x4f   : > { %2147 = vsyncadd (%p2271_p8), %s250_s28, 4294965248  ;;  %s258_s25 = sand.u32 1, %s2251_s23   ;;  %s2383_s17 = scalar_lea.vmem [#allocation10], %s2371_s10 }
  0x50   : > { %s259_s9 = scalar_lea.sflag [#allocation11], %s258_s25 }
  0x51   : > { %2149 = dma.done.wait (%p2271_p8), %s259_s9, 4096  }
  0x52   : > { %2151 = vsyncadd (%p2271_p8), %s259_s9, 4294963200  ;;  %v408_v0 = vld [vmem:[%s2383_s17 + $0x78] sm:$0xff]  ;;  %v407_v1 = vld [vmem:[%s2383_s17 + $0x70] sm:$0xff]  ;;  %vm312_vm0 = vcmask 7168   ;;  %v2186_v48 = vmov -inf   ;;  %s554_s23 = sld [smem:[#allocation6 + %s2170_s21]]  ;;  %v556_v49 = vlaneseq }
  0x53   : > { %1710 = vmatprep.subr.mxu0 %v408_v0  ;;  %v406_v2 = vld [vmem:[%s2383_s17 + $0x68] sm:$0xff]  ;;  %v361_v3 = vld [vmem:[%s2375_s16] sm:$0xff]  ;;  %v404_v6 = vld [vmem:[%s2383_s17 + $0x58] sm:$0xff]  ;;  %313 = vst.msk [vmem:[#allocation2] sm:$0xff] %vm312_vm0, %v2186_v48  ;;  %s2575_s29 = scalar_lea.vmem [#allocation12], %s2371_s10  ;;  %s2892_s11 = scalar_lea.vmem [#allocation13], %s2371_s10 }
  0x54   : > { %1711 = vmatpush3.xpose.msra.mxu0 %v408_v0  ;;  %v377_v4 = vmul.f32 0.17677669, %v361_v3  ;;  %v405_v5 = vld [vmem:[%s2383_s17 + $0x60] sm:$0xff]  ;;  %v403_v7 = vld [vmem:[%s2383_s17 + $0x50] sm:$0xff]  ;;  %v402_v8 = vld [vmem:[%s2383_s17 + $0x48] sm:$0xff]  ;;  %314 = vst.msk [vmem:[#allocation2 + $0x8] sm:$0xff] %vm312_vm0, %v2186_v48 }
  0x55   : > { %1712 = vmatprep.subr.mxu0 %v407_v1  ;;  %v401_v9 = vld [vmem:[%s2383_s17 + $0x40] sm:$0xff]  ;;  %v400_v10 = vld [vmem:[%s2383_s17 + $0x38] sm:$0xff]  ;;  %v399_v11 = vld [vmem:[%s2383_s17 + $0x30] sm:$0xff]  ;;  %315 = vst.msk [vmem:[#allocation2 + $0x10] sm:$0xff] %vm312_vm0, %v2186_v48  ;;  %v2438_v50 = vand.u32 127, %v556_v49  ;;  %s1645_s13 = sshll.u32 %s2170_s21, 11 }
  0x56   : > { %1742 = vmatprep.mubr.f32.mxu0 %v377_v4  ;;  %v398_v12 = vld [vmem:[%s2383_s17 + $0x28] sm:$0xff]  ;;  %v397_v13 = vld [vmem:[%s2383_s17 + $0x20] sm:$0xff]  ;;  %v396_v14 = vld [vmem:[%s2383_s17 + $0x18] sm:$0xff]  ;;  %316 = vst.msk [vmem:[#allocation2 + $0x18] sm:$0xff] %vm312_vm0, %v2186_v48  ;;  %s1480_s15 = sshll.u32 %s2892_s11, 4  ;;  %s2919_s7 = scalar_lea.hbm %s2974_s4, %s1645_s13  ;;  %s2921_s15 = int_to_ptr.vmem [resolvable:$true] %s1480_s15 }
  0x57   : > { %v395_v15 = vld [vmem:[%s2383_s17 + $0x10] sm:$0xff]  ;;  %v394_v16 = vld [vmem:[%s2383_s17 + $0x8] sm:$0xff]  ;;  %v393_v17 = vld [vmem:[%s2383_s17] sm:$0xff]  ;;  %317 = vst.msk [vmem:[#allocation2 + $0x20] sm:$0xff] %vm312_vm0, %v2186_v48  ;;  %vm578_vm2 = vcmp.lt.s32.totalorder %v2438_v50, 8  ;;  %s1465_s24 = scalar_lea.sflag [#allocation9], %s2368_s26 }
  0x58   : > { %1713 = vmatpush3.xpose.msra.mxu0 %v407_v1  ;;  %v362_v18 = vld [vmem:[%s2375_s16 + $0x8] sm:$0xff]  ;;  %v363_v19 = vld [vmem:[%s2375_s16 + $0x10] sm:$0xff]  ;;  %v364_v22 = vld [vmem:[%s2375_s16 + $0x18] sm:$0xff]  ;;  %318 = vst.msk [vmem:[#allocation2 + $0x28] sm:$0xff] %vm312_vm0, %v2186_v48  ;;  %v560_v51 = vstv %s554_s23  ;;  %s2092_s21 = scalar_lea.vmem %s2921_s15, 2048  ;;  %s2189_s12 = smov [#allocation13]  }
  0x59   : > { %1714 = vmatprep.subr.mxu0 %v406_v2  ;;  %v378_v20 = vmul.f32 0.17677669, %v362_v18  ;;  %v379_v21 = vmul.f32 0.17677669, %v363_v19  ;;  %v365_v23 = vld [vmem:[%s2375_s16 + $0x20] sm:$0xff]  ;;  %v366_v26 = vld [vmem:[%s2375_s16 + $0x28] sm:$0xff]  ;;  %vm2441_vm1 = vcmp.lt.s32.totalorder %v2438_v50, %v560_v51  ;;  %p2093_p8 = scmp.ne.s32.totalorder %s2921_s15, %s2092_s21 }
  0x5a   : > { %v380_v24 = vmul.f32 0.17677669, %v364_v22  ;;  %v381_v25 = vmul.f32 0.17677669, %v365_v23  ;;  %v367_v27 = vld [vmem:[%s2375_s16 + $0x30] sm:$0xff]  ;;  %v368_v30 = vld [vmem:[%s2375_s16 + $0x38] sm:$0xff] }
  0x5b   : > { %v382_v28 = vmul.f32 0.17677669, %v366_v26  ;;  %v383_v29 = vmul.f32 0.17677669, %v367_v27  ;;  %v369_v31 = vld [vmem:[%s2375_s16 + $0x40] sm:$0xff]  ;;  %v370_v34 = vld [vmem:[%s2375_s16 + $0x48] sm:$0xff]  ;;  %p2094_p0 = pnand %p2093_p8, %p2275_p9 }
  0x5c   : > { %1715 = vmatpush3.xpose.msra.mxu0 %v406_v2  ;;  %v384_v32 = vmul.f32 0.17677669, %v368_v30  ;;  %v385_v33 = vmul.f32 0.17677669, %v369_v31  ;;  %v371_v35 = vld [vmem:[%s2375_s16 + $0x50] sm:$0xff]  ;;  %v372_v38 = vld [vmem:[%s2375_s16 + $0x58] sm:$0xff] }
  0x5d   : > { %1716 = vmatprep.subr.mxu0 %v405_v5  ;;  %v386_v36 = vmul.f32 0.17677669, %v370_v34  ;;  %v387_v37 = vmul.f32 0.17677669, %v371_v35  ;;  %v373_v39 = vld [vmem:[%s2375_s16 + $0x60] sm:$0xff]  ;;  %v374_v42 = vld [vmem:[%s2375_s16 + $0x68] sm:$0xff]  ;;  %p2095_p3 = pneg %p2094_p0 }
  0x5e   : > { %v388_v40 = vmul.f32 0.17677669, %v372_v38  ;;  %v389_v41 = vmul.f32 0.17677669, %v373_v39  ;;  %v375_v43 = vld [vmem:[%s2375_s16 + $0x70] sm:$0xff]  ;;  %v376_v46 = vld [vmem:[%s2375_s16 + $0x78] sm:$0xff] }
  0x5f   : > { %v390_v44 = vmul.f32 0.17677669, %v374_v42  ;;  %v391_v45 = vmul.f32 0.17677669, %v375_v43  ;;  %v392_v47 = vmul.f32 0.17677669, %v376_v46 }
  0x60   : > { %1717 = vmatpush3.xpose.msra.mxu0 %v405_v5  ;;  %319 = vst.msk [vmem:[#allocation2 + $0x30] sm:$0xff] %vm312_vm0, %v2186_v48  ;;  %320 = vst.msk [vmem:[#allocation2 + $0x38] sm:$0xff] %vm312_vm0, %v2186_v48  ;;  %v1059_v39 = vld [vmem:[%s2575_s29 + $0x78] sm:$0xff]  ;;  %v1056_v42 = vld [vmem:[%s2575_s29 + $0x60] sm:$0xff]  ;;  %s2096_s27 = sshll.u32 %s2189_s12, 4  ;;  %s2097_s27 = int_to_ptr.vmem [resolvable:$false] %s2096_s27 }
  0x61   : > { %1718 = vmatprep.subr.mxu0 %v404_v6  ;;  %321 = vst.msk [vmem:[#allocation2 + $0x40] sm:$0xff] %vm312_vm0, %v2186_v48  ;;  %322 = vst.msk [vmem:[#allocation2 + $0x48] sm:$0xff] %vm312_vm0, %v2186_v48  ;;  %1766 = vmatprep.subr.mxu1 %v1059_v39  ;;  %v1055_v43 = vld [vmem:[%s2575_s29 + $0x58] sm:$0xff]  ;;  %v2591_v51 = vld [vmem:[#allocation2 + $0x8] sm:$0xff]  ;;  %s2098_s14 = scalar_lea.vmem %s2097_s27, 4096  ;;  %p2099_p4 = scmp.lt.s32.totalorder %s2921_s15, %s2097_s27 }
  0x62   : > { %323 = vst.msk [vmem:[#allocation2 + $0x50] sm:$0xff] %vm312_vm0, %v2186_v48  ;;  %324 = vst.msk [vmem:[#allocation2 + $0x58] sm:$0xff] %vm312_vm0, %v2186_v48  ;;  %1767 = vmatpush3.msra.mxu1 %v1059_v39  ;;  %v1045_v39 = vld [vmem:[%s2575_s29 + $0x8] sm:$0xff]  ;;  %p2100_p10 = scmp.lt.s32.totalorder %s2098_s14, %s2092_s21 }
  0x63   : > { %325 = vst.msk [vmem:[#allocation2 + $0x60] sm:$0xff] %vm312_vm0, %v2186_v48  ;;  %326 = vst.msk [vmem:[#allocation2 + $0x68] sm:$0xff] %vm312_vm0, %v2186_v48 }
  0x64   : > { %1719 = vmatpush3.xpose.msra.mxu0 %v404_v6  ;;  %327 = vst.msk [vmem:[#allocation2 + $0x70] sm:$0xff] %vm312_vm0, %v2186_v48  ;;  %328 = vst.msk [vmem:[#allocation2 + $0x78] sm:$0xff] %vm312_vm0, %v2186_v48  ;;  %v1053_v48 = vld [vmem:[%s2575_s29 + $0x48] sm:$0xff]  ;;  %p2101_p13 = por %p2100_p10, %p2099_p4 }
  0x65   : > { %1720 = vmatprep.subr.mxu0 %v403_v7 }
  0x66   : > { %p2102_p12 = pnand %p2101_p13, %p2095_p3 }
  0x68   : > { %1721 = vmatpush3.xpose.msra.mxu0 %v403_v7 }
  0x69   : > { %1722 = vmatprep.subr.mxu0 %v402_v8 }
  0x6c   : > { %1723 = vmatpush3.xpose.msra.mxu0 %v402_v8 }
  0x6d   : > { %1724 = vmatprep.subr.mxu0 %v401_v9 }
  0x70   : > { %1725 = vmatpush3.xpose.msra.mxu0 %v401_v9 }
  0x71   : > { %1726 = vmatprep.subr.mxu0 %v400_v10 }
  0x74   : > { %1727 = vmatpush3.xpose.msra.mxu0 %v400_v10 }
  0x75   : > { %1728 = vmatprep.subr.mxu0 %v399_v11 }
  0x78   : > { %1729 = vmatpush3.xpose.msra.mxu0 %v399_v11 }
  0x79   : > { %1730 = vmatprep.subr.mxu0 %v398_v12 }
  0x7c   : > { %1731 = vmatpush3.xpose.msra.mxu0 %v398_v12 }
  0x7d   : > { %1732 = vmatprep.subr.mxu0 %v397_v13 }
  0x80   : > { %1733 = vmatpush3.xpose.msra.mxu0 %v397_v13 }
  0x81   : > { %1734 = vmatprep.subr.mxu0 %v396_v14 }
  0x84   : > { %1735 = vmatpush3.xpose.msra.mxu0 %v396_v14  ;;  %v2187_v14 = vmov 0  }
  0x85   : > { %1736 = vmatprep.subr.mxu0 %v395_v15  ;;  %1902 = vset.pattern.permute.xlu0 %v2187_v14 }
  0x86   : > { %1903 = vset.pattern.permute.xlu1 %v2187_v14 }
  0x88   : > { %1737 = vmatpush3.xpose.msra.mxu0 %v395_v15 }
  0x89   : > { %1738 = vmatprep.subr.mxu0 %v394_v16 }
  0x8c   : > { %1739 = vmatpush3.xpose.msra.mxu0 %v394_v16 }
  0x8d   : > { %1740 = vmatprep.subr.mxu0 %v393_v17 }
  0x90   : > { %1741 = vmatpush3.xpose.msra.mxu0 %v393_v17 }
  0x93   : > { %1743 = vmatmul.mubr.f32.vlgmr.msra.gmra.mxu0 %v378_v20 }
  0x94   : > { %1745 = vmatprep.mubr.f32.mxu0 %v379_v21 }
  0x97   : > { %1746 = vmatmul.mubr.f32.gmra.mxu0 %v380_v24 }
  0x98   : > { %1748 = vmatprep.mubr.f32.mxu0 %v381_v25 }
  0x9b   : > { %1749 = vmatmul.mubr.f32.gmra.mxu0 %v382_v28 }
  0x9c   : > { %1751 = vmatprep.mubr.f32.mxu0 %v383_v29 }
  0x9f   : > { %1752 = vmatmul.mubr.f32.gmra.mxu0 %v384_v32 }
  0xa0   : > { %1754 = vmatprep.mubr.f32.mxu0 %v385_v33  ;;  %v2188_v33 = vmov 0.0  }
  0xa1   : > { %329 = vst.msk [vmem:[#allocation3] sm:$0xff] %vm312_vm0, %v2188_v33  ;;  %330 = vst.msk [vmem:[#allocation3 + $0x8] sm:$0xff] %vm312_vm0, %v2188_v33 }
  0xa2   : > { %331 = vst.msk [vmem:[#allocation3 + $0x10] sm:$0xff] %vm312_vm0, %v2188_v33  ;;  %332 = vst.msk [vmem:[#allocation3 + $0x18] sm:$0xff] %vm312_vm0, %v2188_v33 }
  0xa3   : > { %1755 = vmatmul.mubr.f32.gmra.mxu0 %v386_v36  ;;  %333 = vst.msk [vmem:[#allocation3 + $0x20] sm:$0xff] %vm312_vm0, %v2188_v33  ;;  %334 = vst.msk [vmem:[#allocation3 + $0x28] sm:$0xff] %vm312_vm0, %v2188_v33 }
  0xa4   : > { %1757 = vmatprep.mubr.f32.mxu0 %v387_v37  ;;  %335 = vst.msk [vmem:[#allocation3 + $0x30] sm:$0xff] %vm312_vm0, %v2188_v33  ;;  %336 = vst.msk [vmem:[#allocation3 + $0x38] sm:$0xff] %vm312_vm0, %v2188_v33 }
  0xa5   : > { %337 = vst.msk [vmem:[#allocation3 + $0x40] sm:$0xff] %vm312_vm0, %v2188_v33  ;;  %338 = vst.msk [vmem:[#allocation3 + $0x48] sm:$0xff] %vm312_vm0, %v2188_v33 }
  0xa6   : > { %339 = vst.msk [vmem:[#allocation3 + $0x50] sm:$0xff] %vm312_vm0, %v2188_v33  ;;  %340 = vst.msk [vmem:[#allocation3 + $0x58] sm:$0xff] %vm312_vm0, %v2188_v33 }
  0xa7   : > { %1758 = vmatmul.mubr.f32.gmra.mxu0 %v388_v40  ;;  %341 = vst.msk [vmem:[#allocation3 + $0x60] sm:$0xff] %vm312_vm0, %v2188_v33  ;;  %342 = vst.msk [vmem:[#allocation3 + $0x68] sm:$0xff] %vm312_vm0, %v2188_v33  ;;  %v1058_v40 = vld [vmem:[%s2575_s29 + $0x70] sm:$0xff] }
  0xa8   : > { %1760 = vmatprep.mubr.f32.mxu0 %v389_v41  ;;  %343 = vst.msk [vmem:[#allocation3 + $0x70] sm:$0xff] %vm312_vm0, %v2188_v33  ;;  %344 = vst.msk [vmem:[#allocation3 + $0x78] sm:$0xff] %vm312_vm0, %v2188_v33  ;;  %v1057_v41 = vld [vmem:[%s2575_s29 + $0x68] sm:$0xff]  ;;  %1768 = vmatprep.subr.mxu1 %v1058_v40 }
  0xa9   : > { %1769 = vmatpush3.msra.mxu1 %v1058_v40 }
  0xaa   : > { %1770 = vmatprep.subr.mxu1 %v1057_v41 }
  0xab   : > { %1761 = vmatmul.mubr.f32.gmra.mxu0 %v390_v44  ;;  %1771 = vmatpush3.msra.mxu1 %v1057_v41  ;;  %v2582_v44 = vld [vmem:[#allocation2] sm:$0xff] }
  0xac   : > { %1763 = vmatprep.mubr.f32.mxu0 %v391_v45  ;;  %1772 = vmatprep.subr.mxu1 %v1056_v42  ;;  %v1054_v45 = vld [vmem:[%s2575_s29 + $0x50] sm:$0xff] }
  0xad   : > { %1773 = vmatpush3.msra.mxu1 %v1056_v42 }
  0xae   : > { %1774 = vmatprep.subr.mxu1 %v1055_v43 }
  0xaf   : > { %1764 = vmatmul.mubr.f32.gmra.mxu0 %v392_v47  ;;  %1775 = vmatpush3.msra.mxu1 %v1055_v43  ;;  %v2585_v47 = vld [vmem:[#allocation2 + $0x18] sm:$0xff]  ;;  %v2675_v43 = vld [vmem:[#allocation2 + $0x50] sm:$0xff] }
  0xb0   : > { %1776 = vmatprep.subr.mxu1 %v1054_v45 }
  0xb1   : > { %1777 = vmatpush3.msra.mxu1 %v1054_v45  ;;  %v1044_v45 = vld [vmem:[%s2575_s29] sm:$0xff] }
  0xb2   : > { %1778 = vmatprep.subr.mxu1 %v1053_v48 }
  0xb3   : > { %1779 = vmatpush3.msra.mxu1 %v1053_v48 }
 0x153   : > { %v1744_v52 = vpop.f32.mrf.mxu0 }
 0x154   : > { %v563_v58 = vsel %vm2441_vm1, %v1744_v52, -1000000.0  ;;  %v1052_v52 = vld [vmem:[%s2575_s29 + $0x40] sm:$0xff] }
 0x155   : > { %v475_v54 = vpop.f32.mrf.mxu0  ;;  %v2466_v63 = vsel %vm578_vm2, %v563_v58, -1e+30  ;;  %1780 = vmatprep.subr.mxu1 %v1052_v52  ;;  %v1051_v58 = vld [vmem:[%s2575_s29 + $0x38] sm:$0xff] }
 0x156   : > { %v562_v55 = vsel %vm2441_vm1, %v475_v54, -1000000.0  ;;  %1781 = vmatpush3.msra.mxu1 %v1052_v52 }
 0x157   : > { %v1747_v56 = vpop.f32.mrf.mxu0  ;;  %v2450_v57 = vsel %vm578_vm2, %v562_v55, -1e+30  ;;  %1782 = vmatprep.subr.mxu1 %v1051_v58 }
 0x158   : > { %v565_v59 = vsel %vm2441_vm1, %v1747_v56, -1000000.0  ;;  %611 = vmax.xlane.f32.xlu0 %v2450_v57  ;;  %v2602_v56 = vld [vmem:[#allocation2 + $0x10] sm:$0xff]  ;;  %1783 = vmatpush3.msra.mxu1 %v1051_v58 }
 0x159   : > { %v2459_v60 = vsel %vm578_vm2, %v565_v59, -1e+30  ;;  %v485_v61 = vpop.f32.mrf.mxu0 }
 0x15a   : > { %617 = vmax.xlane.f32.xlu1 %v2459_v60  ;;  %v564_v62 = vsel %vm2441_vm1, %v485_v61, -1000000.0 }
 0x15b   : > { %v2470_v0 = vsel %vm578_vm2, %v564_v62, -1e+30  ;;  %v1750_v1 = vpop.f32.mrf.mxu0 }
 0x15c   : > { %613 = vmax.xlane.f32.xlu0 %v2466_v63  ;;  %v567_v2 = vsel %vm2441_vm1, %v1750_v1, -1000000.0  ;;  %v2612_v1 = vld [vmem:[#allocation2 + $0x20] sm:$0xff] }
 0x15d   : > { %v495_v3 = vpop.f32.mrf.mxu0  ;;  %v2480_v5 = vsel %vm578_vm2, %v567_v2, -1e+30  ;;  %v1050_v2 = vld [vmem:[%s2575_s29 + $0x30] sm:$0xff] }
 0x15e   : > { %615 = vmax.xlane.f32.xlu1 %v2470_v0  ;;  %v566_v4 = vsel %vm2441_vm1, %v495_v3, -1000000.0  ;;  %1784 = vmatprep.subr.mxu1 %v1050_v2 }
 0x15f   : > { %v1753_v6 = vpop.f32.mrf.mxu0  ;;  %v2484_v7 = vsel %vm578_vm2, %v566_v4, -1e+30  ;;  %1785 = vmatpush3.msra.mxu1 %v1050_v2  ;;  %v2696_v2 = vld [vmem:[#allocation2 + $0x60] sm:$0xff] }
 0x160   : > { %v569_v8 = vsel %vm2441_vm1, %v1753_v6, -1000000.0  ;;  %619 = vmax.xlane.f32.xlu0 %v2484_v7  ;;  %v2623_v6 = vld [vmem:[#allocation2 + $0x28] sm:$0xff] }
 0x161   : > { %v505_v9 = vpop.f32.mrf.mxu0  ;;  %v2494_v11 = vsel %vm578_vm2, %v569_v8, -1e+30 }
 0x162   : > { %621 = vmax.xlane.f32.xlu1 %v2480_v5  ;;  %v568_v10 = vsel %vm2441_vm1, %v505_v9, -1000000.0  ;;  %v1049_v9 = vld [vmem:[%s2575_s29 + $0x28] sm:$0xff] }
 0x163   : > { %v1756_v12 = vpop.f32.mrf.mxu0  ;;  %v2498_v13 = vsel %vm578_vm2, %v568_v10, -1e+30  ;;  %1786 = vmatprep.subr.mxu1 %v1049_v9 }
 0x164   : > { %v571_v15 = vsel %vm2441_vm1, %v1756_v12, -1000000.0  ;;  %623 = vmax.xlane.f32.xlu0 %v2498_v13  ;;  %1787 = vmatpush3.msra.mxu1 %v1049_v9 }
 0x165   : > { %v515_v16 = vpop.f32.mrf.mxu0  ;;  %v2508_v18 = vsel %vm578_vm2, %v571_v15, -1e+30  ;;  %v2633_v15 = vld [vmem:[#allocation2 + $0x30] sm:$0xff] }
 0x166   : > { %625 = vmax.xlane.f32.xlu1 %v2494_v11  ;;  %v570_v17 = vsel %vm2441_vm1, %v515_v16, -1000000.0  ;;  %v1048_v16 = vld [vmem:[%s2575_s29 + $0x20] sm:$0xff] }
 0x167   : > { %v1759_v19 = vpop.f32.mrf.mxu0  ;;  %v2512_v20 = vsel %vm578_vm2, %v570_v17, -1e+30  ;;  %1788 = vmatprep.subr.mxu1 %v1048_v16 }
 0x168   : > { %v573_v21 = vsel %vm2441_vm1, %v1759_v19, -1000000.0  ;;  %627 = vmax.xlane.f32.xlu0 %v2512_v20  ;;  %1789 = vmatpush3.msra.mxu1 %v1048_v16 }
 0x169   : > { %v525_v22 = vpop.f32.mrf.mxu0  ;;  %v2522_v24 = vsel %vm578_vm2, %v573_v21, -1e+30  ;;  %v2644_v21 = vld [vmem:[#allocation2 + $0x38] sm:$0xff] }
 0x16a   : > { %629 = vmax.xlane.f32.xlu1 %v2508_v18  ;;  %v572_v23 = vsel %vm2441_vm1, %v525_v22, -1000000.0 }
 0x16b   : > { %v1762_v25 = vpop.f32.mrf.mxu0  ;;  %v2526_v26 = vsel %vm578_vm2, %v572_v23, -1e+30  ;;  %v1047_v23 = vld [vmem:[%s2575_s29 + $0x18] sm:$0xff] }
 0x16c   : > { %v575_v27 = vsel %vm2441_vm1, %v1762_v25, -1000000.0  ;;  %631 = vmax.xlane.f32.xlu0 %v2526_v26  ;;  %1790 = vmatprep.subr.mxu1 %v1047_v23 }
 0x16d   : > { %v535_v28 = vpop.f32.mrf.mxu0  ;;  %v2536_v30 = vsel %vm578_vm2, %v575_v27, -1e+30  ;;  %1791 = vmatpush3.msra.mxu1 %v1047_v23 }
 0x16e   : > { %633 = vmax.xlane.f32.xlu1 %v2522_v24  ;;  %v574_v29 = vsel %vm2441_vm1, %v535_v28, -1000000.0 }
 0x16f   : > { %v1765_v31 = vpop.f32.mrf.mxu0  ;;  %v2540_v32 = vsel %vm578_vm2, %v574_v29, -1e+30  ;;  %v2654_v29 = vld [vmem:[#allocation2 + $0x40] sm:$0xff] }
 0x170   : > { %v577_v34 = vsel %vm2441_vm1, %v1765_v31, -1000000.0  ;;  %635 = vmax.xlane.f32.xlu0 %v2540_v32  ;;  %v1046_v31 = vld [vmem:[%s2575_s29 + $0x10] sm:$0xff] }
 0x171   : > { %v545_v35 = vpop.f32.mrf.mxu0  ;;  %v2566_v37 = vsel %vm578_vm2, %v577_v34, -1e+30  ;;  %1792 = vmatprep.subr.mxu1 %v1046_v31 }
 0x172   : > { %637 = vmax.xlane.f32.xlu1 %v2536_v30  ;;  %v576_v36 = vsel %vm2441_vm1, %v545_v35, -1000000.0  ;;  %v2665_v35 = vld [vmem:[#allocation2 + $0x48] sm:$0xff]  ;;  %1793 = vmatpush3.msra.mxu1 %v1046_v31  ;;  %v2716_v31 = vld [vmem:[#allocation2 + $0x70] sm:$0xff] }
 0x173   : > { %v2570_v38 = vsel %vm578_vm2, %v576_v36, -1e+30  ;;  %1794 = vmatprep.subr.mxu1 %v1045_v39 }
 0x174   : > { %639 = vmax.xlane.f32.xlu0 %v2570_v38  ;;  %1795 = vmatpush3.msra.mxu1 %v1045_v39 }
 0x175   : > { %1796 = vmatprep.subr.mxu1 %v1044_v45 }
 0x176   : > { %641 = vmax.xlane.f32.xlu1 %v2566_v37  ;;  %1797 = vmatpush3.msra.mxu1 %v1044_v45 }
 0x1e1   : > { %v612_v46 = vpop.xlane.xlu0 %611 }
 0x1e2   : > { %v2589_v49 = vmax.f32 %v2582_v44, %v612_v46 }
 0x1e3   : > { %v618_v50 = vpop.xlane.xlu1 %617 }
 0x1e4   : > { %v659_v53 = vsub.f32 %v2582_v44, %v2589_v49  ;;  %1237 = vst.msk [vmem:[#allocation2] sm:$0xff] %vm312_vm0, %v2589_v49  ;;  %v2599_v54 = vmax.f32 %v2585_v47, %v618_v50  ;;  %709 = vperm.xlu0 %1902, %v2589_v49   ;;  %v2686_v50 = vld [vmem:[#allocation2 + $0x58] sm:$0xff] }
 0x1e5   : > { %v614_v55 = vpop.xlane.xlu0 %613 }
 0x1e6   : > { %1240 = vst.msk [vmem:[#allocation2 + $0x18] sm:$0xff] %vm312_vm0, %v2599_v54  ;;  %v2610_v61 = vmax.f32 %v2591_v51, %v614_v55 }
 0x1e7   : > { %v616_v62 = vpop.xlane.xlu1 %615 }
 0x1e8   : > { %v660_v3 = vsub.f32 %v2591_v51, %v2610_v61  ;;  %1238 = vst.msk [vmem:[#allocation2 + $0x8] sm:$0xff] %vm312_vm0, %v2610_v61  ;;  %v2620_v4 = vmax.f32 %v2602_v56, %v616_v62  ;;  %714 = vperm.xlu1 %1903, %v2610_v61  }
 0x1e9   : > { %v620_v8 = vpop.xlane.xlu0 %619 }
 0x1ea   : > { %v661_v10 = vsub.f32 %v2602_v56, %v2620_v4  ;;  %1239 = vst.msk [vmem:[#allocation2 + $0x10] sm:$0xff] %vm312_vm0, %v2620_v4  ;;  %v2631_v12 = vmax.f32 %v2612_v1, %v620_v8 }
 0x1eb   : > { %v622_v14 = vpop.xlane.xlu1 %621 }
 0x1ec   : > { %v2637_v17 = vmax.f32 %v2623_v6, %v622_v14  ;;  %724 = vperm.xlu1 %1903, %v2599_v54   ;;  %1241 = vst.msk [vmem:[#allocation2 + $0x20] sm:$0xff] %vm312_vm0, %v2631_v12  ;;  %v2706_v14 = vld [vmem:[#allocation2 + $0x68] sm:$0xff]  ;;  %v2995_v51 = vsub.f32 %v2612_v1, %v2631_v12 }
 0x1ed   : > { %v624_v22 = vpop.xlane.xlu0 %623 }
 0x1ee   : > { %1242 = vst.msk [vmem:[#allocation2 + $0x28] sm:$0xff] %vm312_vm0, %v2637_v17  ;;  %v2652_v27 = vmax.f32 %v2633_v15, %v624_v22  ;;  %v683_v61 = vmul.f32 1.442695, %v2995_v51  ;;  %v2998_v44 = vsub.f32 %v2623_v6, %v2637_v17 }
 0x1ef   : > { %v626_v28 = vpop.xlane.xlu1 %625 }
 0x1f0   : > { %v2658_v33 = vmax.f32 %v2644_v21, %v626_v28  ;;  %719 = vperm.xlu1 %1903, %v2620_v4   ;;  %1243 = vst.msk [vmem:[#allocation2 + $0x30] sm:$0xff] %vm312_vm0, %v2652_v27  ;;  %v2997_v56 = vsub.f32 %v2633_v15, %v2652_v27  ;;  %v685_v49 = vmul.f32 1.442695, %v2998_v44 }
 0x1f1   : > { %v628_v36 = vpop.xlane.xlu0 %627 }
 0x1f2   : > { %1244 = vst.msk [vmem:[#allocation2 + $0x38] sm:$0xff] %vm312_vm0, %v2658_v33  ;;  %v2673_v41 = vmax.f32 %v2654_v29, %v628_v36  ;;  %v687_v4 = vmul.f32 1.442695, %v2997_v56  ;;  %v842_v56 = vld [vmem:[#allocation3 + $0x38] sm:$0xff] }
 0x1f3   : > { %v630_v42 = vpop.xlane.xlu1 %629 }
 0x1f4   : > { %v2679_v46 = vmax.f32 %v2665_v35, %v630_v42  ;;  %734 = vperm.xlu1 %1903, %v2637_v17   ;;  %1245 = vst.msk [vmem:[#allocation2 + $0x40] sm:$0xff] %vm312_vm0, %v2673_v41  ;;  %v2726_v42 = vld [vmem:[#allocation2 + $0x78] sm:$0xff] }
 0x1f5   : > { %v632_v52 = vpop.xlane.xlu0 %631 }
 0x1f6   : > { %1246 = vst.msk [vmem:[#allocation2 + $0x48] sm:$0xff] %vm312_vm0, %v2679_v46  ;;  %754 = vperm.xlu0 %1902, %v2679_v46   ;;  %v2694_v58 = vmax.f32 %v2675_v43, %v632_v52  ;;  %v3002_v6 = vsub.f32 %v2665_v35, %v2679_v46 }
 0x1f7   : > { %v634_v62 = vpop.xlane.xlu1 %633 }
 0x1f8   : > { %v2699_v8 = vmax.f32 %v2686_v50, %v634_v62  ;;  %729 = vperm.xlu1 %1903, %v2631_v12   ;;  %1247 = vst.msk [vmem:[#allocation2 + $0x50] sm:$0xff] %vm312_vm0, %v2694_v58  ;;  %v3001_v12 = vsub.f32 %v2675_v43, %v2694_v58  ;;  %v693_v17 = vmul.f32 1.442695, %v3002_v6 }
 0x1f9   : > { %v636_v16 = vpop.xlane.xlu0 %635 }
 0x1fa   : > { %1248 = vst.msk [vmem:[#allocation2 + $0x58] sm:$0xff] %vm312_vm0, %v2699_v8  ;;  %764 = vperm.xlu0 %1902, %v2699_v8   ;;  %v2714_v23 = vmax.f32 %v2696_v2, %v636_v16  ;;  %v695_v15 = vmul.f32 1.442695, %v3001_v12 }
 0x1fb   : > { %v638_v28 = vpop.xlane.xlu1 %637 }
 0x1fc   : > { %v2719_v36 = vmax.f32 %v2706_v14, %v638_v28  ;;  %744 = vperm.xlu1 %1903, %v2658_v33   ;;  %1249 = vst.msk [vmem:[#allocation2 + $0x60] sm:$0xff] %vm312_vm0, %v2714_v23 }
 0x1fd   : > { %v640_v45 = vpop.xlane.xlu0 %639 }
 0x1fe   : > { %1250 = vst.msk [vmem:[#allocation2 + $0x68] sm:$0xff] %vm312_vm0, %v2719_v36  ;;  %774 = vperm.xlu0 %1902, %v2719_v36   ;;  %v2734_v62 = vmax.f32 %v2716_v31, %v640_v45 }
 0x1ff   : > { %v642_v16 = vpop.xlane.xlu1 %641 }
 0x200   : > { %v2737_v28 = vmax.f32 %v2726_v42, %v642_v16  ;;  %739 = vperm.xlu1 %1903, %v2652_v27   ;;  %1251 = vst.msk [vmem:[#allocation2 + $0x70] sm:$0xff] %vm312_vm0, %v2734_v62  ;;  %v3005_v35 = vsub.f32 %v2716_v31, %v2734_v62 }
 0x202   : > { %1252 = vst.msk [vmem:[#allocation2 + $0x78] sm:$0xff] %vm312_vm0, %v2737_v28  ;;  %784 = vperm.xlu0 %1902, %v2737_v28   ;;  %v703_v46 = vmul.f32 1.442695, %v3005_v35  ;;  %v3007_v31 = vsub.f32 %v2726_v42, %v2737_v28 }
 0x204   : > { %749 = vperm.xlu1 %1903, %v2673_v41  }
 0x208   : > { %759 = vperm.xlu1 %1903, %v2694_v58  }
 0x20c   : > { %769 = vperm.xlu1 %1903, %v2714_v23  }
 0x210   : > { %779 = vperm.xlu1 %1903, %v2734_v62   ;;  %v705_v62 = vmul.f32 1.442695, %v3007_v31 }
 0x25f   : > { %v710_v45 = vpop.permute.xlu0 %709 }
 0x260   : > { %v787_v16 = vsub.f32 %v2450_v57, %v710_v45 }
 0x262   : > { %v803_v22 = vmul.f32 1.442695, %v787_v16 }
 0x263   : > { %v715_v39 = vpop.permute.xlu1 %714 }
 0x264   : > { %1904 = vpow2.f32 %v803_v22  ;;  %v788_v52 = vsub.f32 %v2466_v63, %v715_v39 }
 0x266   : > { %v805_v55 = vmul.f32 1.442695, %v788_v52 }
 0x267   : > { %v725_v9 = vpop.permute.xlu1 %724 }
 0x268   : > { %1906 = vpow2.f32 %v805_v55  ;;  %v790_v40 = vsub.f32 %v2459_v60, %v725_v9 }
 0x26a   : > { %v809_v48 = vmul.f32 1.442695, %v790_v40 }
 0x26b   : > { %v720_v25 = vpop.permute.xlu1 %719 }
 0x26c   : > { %1908 = vpow2.f32 %v809_v48  ;;  %v789_v34 = vsub.f32 %v2470_v0, %v720_v25 }
 0x26e   : > { %v807_v59 = vmul.f32 1.442695, %v789_v34 }
 0x26f   : > { %v735_v19 = vpop.permute.xlu1 %734 }
 0x270   : > { %1910 = vpow2.f32 %v807_v59  ;;  %v792_v57 = vsub.f32 %v2480_v5, %v735_v19 }
 0x271   : > { %v1905_v45 = vpop.eup %1904  ;;  %v755_v16 = vpop.permute.xlu0 %754 }
 0x272   : > { %v813_v22 = vmul.f32 1.442695, %v792_v57  ;;  %867 = vadd.xlane.f32.xlu1 %v1905_v45  ;;  %1798 = vmatprep.mubr.f32.mxu1 %v1905_v45  ;;  %v796_v5 = vsub.f32 %v2508_v18, %v755_v16 }
 0x273   : > { %v730_v63 = vpop.permute.xlu1 %729 }
 0x274   : > { %1912 = vpow2.f32 %v813_v22  ;;  %v791_v55 = vsub.f32 %v2484_v7, %v730_v63  ;;  %v821_v52 = vmul.f32 1.442695, %v796_v5 }
 0x275   : > { %v1907_v60 = vpop.eup %1906  ;;  %v765_v9 = vpop.permute.xlu0 %764 }
 0x276   : > { %v811_v40 = vmul.f32 1.442695, %v791_v55  ;;  %869 = vadd.xlane.f32.xlu0 %v1907_v60  ;;  %1799 = vmatmul.mubr.f32.vlgmr.msra.gmra.mxu1 %v1907_v60  ;;  %v798_v57 = vsub.f32 %v2522_v24, %v765_v9 }
 0x277   : > { %v745_v0 = vpop.permute.xlu1 %744 }
 0x278   : > { %1914 = vpow2.f32 %v811_v40  ;;  %v794_v59 = vsub.f32 %v2494_v11, %v745_v0  ;;  %v825_v16 = vmul.f32 1.442695, %v798_v57 }
 0x279   : > { %v1909_v25 = vpop.eup %1908  ;;  %v775_v48 = vpop.permute.xlu0 %774 }
 0x27a   : > { %v817_v19 = vmul.f32 1.442695, %v794_v59  ;;  %873 = vadd.xlane.f32.xlu1 %v1909_v25  ;;  %v800_v63 = vsub.f32 %v2536_v30, %v775_v48 }
 0x27b   : > { %v740_v34 = vpop.permute.xlu1 %739 }
 0x27c   : > { %1916 = vpow2.f32 %v817_v19  ;;  %v793_v39 = vsub.f32 %v2498_v13, %v740_v34  ;;  %v829_v9 = vmul.f32 1.442695, %v800_v63 }
 0x27d   : > { %v1911_v7 = vpop.eup %1910  ;;  %v785_v55 = vpop.permute.xlu0 %784 }
 0x27e   : > { %v815_v45 = vmul.f32 1.442695, %v793_v39  ;;  %871 = vadd.xlane.f32.xlu0 %v1911_v7  ;;  %1801 = vmatprep.mubr.f32.mxu1 %v1911_v7  ;;  %v802_v0 = vsub.f32 %v2566_v37, %v785_v55 }
 0x27f   : > { %v750_v22 = vpop.permute.xlu1 %749  ;;  %1802 = vmatmul.mubr.f32.gmra.mxu1 %v1909_v25 }
 0x280   : > { %1918 = vpow2.f32 %v815_v45  ;;  %v795_v11 = vsub.f32 %v2512_v20, %v750_v22  ;;  %v833_v5 = vmul.f32 1.442695, %v802_v0  ;;  %v677_v22 = vmul.f32 1.442695, %v660_v3  ;;  %v835_v0 = vld [vmem:[#allocation3] sm:$0xff] }
 0x281   : > { %v1913_v18 = vpop.eup %1912  ;;  %1920 = vpow2.f32 %v821_v52  ;;  %v2996_v3 = vsub.f32 %v2585_v47, %v2599_v54  ;;  %v3000_v47 = vsub.f32 %v2644_v21, %v2658_v33  ;;  %v3004_v33 = vsub.f32 %v2686_v50, %v2699_v8 }
 0x282   : > { %v819_v60 = vmul.f32 1.442695, %v795_v11  ;;  %877 = vadd.xlane.f32.xlu1 %v1913_v18 }
 0x283   : > { %v760_v13 = vpop.permute.xlu1 %759  ;;  %v681_v63 = vmul.f32 1.442695, %v2996_v3  ;;  %v689_v54 = vmul.f32 1.442695, %v3000_v47  ;;  %v697_v43 = vmul.f32 1.442695, %v3004_v33 }
 0x284   : > { %1922 = vpow2.f32 %v819_v60  ;;  %v797_v24 = vsub.f32 %v2526_v26, %v760_v13 }
 0x285   : > { %v1915_v40 = vpop.eup %1914  ;;  %1924 = vpow2.f32 %v825_v16  ;;  %v675_v16 = vmul.f32 1.442695, %v659_v53  ;;  %v2999_v53 = vsub.f32 %v2654_v29, %v2673_v41  ;;  %v3003_v41 = vsub.f32 %v2696_v2, %v2714_v23 }
 0x286   : > { %v823_v59 = vmul.f32 1.442695, %v797_v24  ;;  %875 = vadd.xlane.f32.xlu0 %v1915_v40  ;;  %1804 = vmatprep.mubr.f32.mxu1 %v1915_v40  ;;  %v3006_v23 = vsub.f32 %v2706_v14, %v2719_v36 }
 0x287   : > { %v770_v20 = vpop.permute.xlu1 %769  ;;  %1805 = vmatmul.mubr.f32.gmra.mxu1 %v1913_v18  ;;  %v679_v18 = vmul.f32 1.442695, %v661_v10  ;;  %v691_v1 = vmul.f32 1.442695, %v2999_v53  ;;  %v699_v55 = vmul.f32 1.442695, %v3003_v41 }
 0x288   : > { %1926 = vpow2.f32 %v823_v59  ;;  %v799_v30 = vsub.f32 %v2540_v32, %v770_v20  ;;  %v701_v13 = vmul.f32 1.442695, %v3006_v23 }
 0x289   : > { %v1917_v25 = vpop.eup %1916  ;;  %1928 = vpow2.f32 %v829_v9 }
 0x28a   : > { %v827_v19 = vmul.f32 1.442695, %v799_v30  ;;  %881 = vadd.xlane.f32.xlu1 %v1917_v25  ;;  %v836_v30 = vld [vmem:[#allocation3 + $0x8] sm:$0xff] }
 0x28b   : > { %v780_v34 = vpop.permute.xlu1 %779 }
 0x28c   : > { %1930 = vpow2.f32 %v827_v19  ;;  %v801_v26 = vsub.f32 %v2570_v38, %v780_v34  ;;  %v838_v34 = vld [vmem:[#allocation3 + $0x18] sm:$0xff] }
 0x28d   : > { %v1919_v48 = vpop.eup %1918  ;;  %1932 = vpow2.f32 %v833_v5 }
 0x28e   : > { %v1921_v37 = vpop.eup %1920  ;;  %v831_v39 = vmul.f32 1.442695, %v801_v26  ;;  %879 = vadd.xlane.f32.xlu0 %v1919_v48  ;;  %1807 = vmatprep.mubr.f32.mxu1 %v1919_v48 }
 0x28f   : > { %885 = vadd.xlane.f32.xlu1 %v1921_v37  ;;  %1808 = vmatmul.mubr.f32.gmra.mxu1 %v1917_v25 }
 0x290   : > { %1934 = vpow2.f32 %v831_v39  ;;  %v837_v39 = vld [vmem:[#allocation3 + $0x10] sm:$0xff] }
 0x291   : > { %v1923_v7 = vpop.eup %1922  ;;  %1936 = vpow2.f32 %v677_v22 }
 0x292   : > { %v1925_v32 = vpop.eup %1924  ;;  %883 = vadd.xlane.f32.xlu0 %v1923_v7  ;;  %1810 = vmatprep.mubr.f32.mxu1 %v1923_v7  ;;  %1938 = vpow2.f32 %v679_v18 }
 0x293   : > { %889 = vadd.xlane.f32.xlu1 %v1925_v32  ;;  %1811 = vmatmul.mubr.f32.gmra.mxu1 %v1921_v37  ;;  %1940 = vpow2.f32 %v675_v16  ;;  %v839_v16 = vld [vmem:[#allocation3 + $0x20] sm:$0xff] }
 0x294   : > { %1942 = vpow2.f32 %v683_v61 }
 0x295   : > { %v1927_v52 = vpop.eup %1926  ;;  %1944 = vpow2.f32 %v681_v63 }
 0x296   : > { %v1929_v57 = vpop.eup %1928  ;;  %887 = vadd.xlane.f32.xlu0 %v1927_v52  ;;  %1813 = vmatprep.mubr.f32.mxu1 %v1927_v52  ;;  %1946 = vpow2.f32 %v687_v4 }
 0x297   : > { %893 = vadd.xlane.f32.xlu1 %v1929_v57  ;;  %1814 = vmatmul.mubr.f32.gmra.mxu1 %v1925_v32  ;;  %1948 = vpow2.f32 %v685_v49 }
 0x298   : > { %1950 = vpow2.f32 %v691_v1 }
 0x299   : > { %v1931_v38 = vpop.eup %1930  ;;  %1952 = vpow2.f32 %v689_v54  ;;  %v844_v54 = vld [vmem:[#allocation3 + $0x48] sm:$0xff] }
 0x29a   : > { %v1933_v45 = vpop.eup %1932  ;;  %891 = vadd.xlane.f32.xlu0 %v1931_v38  ;;  %1816 = vmatprep.mubr.f32.mxu1 %v1931_v38  ;;  %1954 = vpow2.f32 %v695_v15  ;;  %v840_v38 = vld [vmem:[#allocation3 + $0x28] sm:$0xff] }
 0x29b   : > { %897 = vadd.xlane.f32.xlu1 %v1933_v45  ;;  %1817 = vmatmul.mubr.f32.gmra.mxu1 %v1929_v57  ;;  %1956 = vpow2.f32 %v693_v17 }
 0x29c   : > { %1958 = vpow2.f32 %v699_v55  ;;  %v843_v55 = vld [vmem:[#allocation3 + $0x40] sm:$0xff] }
 0x29d   : > { %v1935_v11 = vpop.eup %1934  ;;  %1960 = vpow2.f32 %v697_v43 }
 0x29e   : > { %895 = vadd.xlane.f32.xlu0 %v1935_v11  ;;  %1819 = vmatprep.mubr.f32.mxu1 %v1935_v11  ;;  %v1937_v10 = vpop.eup %1936  ;;  %1962 = vpow2.f32 %v703_v46 }
 0x29f   : > { %1820 = vmatmul.mubr.f32.gmra.mxu1 %v1933_v45  ;;  %v1939_v27 = vpop.eup %1938  ;;  %1964 = vpow2.f32 %v701_v13  ;;  %v852_v5 = vmul.f32 %v1937_v10, %v836_v30 }
 0x2a0   : > { %v1941_v29 = vpop.eup %1940  ;;  %1966 = vpow2.f32 %v705_v62  ;;  %v853_v52 = vmul.f32 %v1939_v27, %v837_v39  ;;  %v845_v62 = vld [vmem:[#allocation3 + $0x50] sm:$0xff] }
 0x2a1   : > { %v2805_v21 = vpop.eup %1942  ;;  %v851_v59 = vmul.f32 %v1941_v29, %v835_v0 }
 0x2a2   : > { %v1945_v58 = vpop.eup %1944  ;;  %v855_v3 = vmul.f32 %v2805_v21, %v839_v16  ;;  %v849_v16 = vld [vmem:[#allocation3 + $0x70] sm:$0xff] }
 0x2a3   : > { %v2814_v60 = vpop.eup %1946  ;;  %v854_v48 = vmul.f32 %v1945_v58, %v838_v34 }
 0x2a4   : > { %v1949_v2 = vpop.eup %1948 }
 0x2a5   : > { %v2820_v50 = vpop.eup %1950  ;;  %v856_v11 = vmul.f32 %v1949_v2, %v840_v38 }
 0x2a6   : > { %v1953_v8 = vpop.eup %1952 }
 0x2a7   : > { %v2826_v24 = vpop.eup %1954  ;;  %v858_v49 = vmul.f32 %v1953_v8, %v842_v56 }
 0x2a8   : > { %v2829_v40 = vpop.eup %1956 }
 0x2a9   : > { %v2831_v14 = vpop.eup %1958 }
 0x2aa   : > { %v2835_v36 = vpop.eup %1960 }
 0x2ab   : > { %v2837_v9 = vpop.eup %1962 }
 0x2ac   : > { %955 = vperm.xlu1 %1903, %v1937_v10   ;;  %v2841_v42 = vpop.eup %1964  ;;  %v841_v10 = vld [vmem:[#allocation3 + $0x30] sm:$0xff] }
 0x2ad   : > { %v2844_v28 = vpop.eup %1966 }
 0x2b0   : > { %960 = vperm.xlu1 %1903, %v1939_v27   ;;  %v857_v27 = vmul.f32 %v2814_v60, %v841_v10 }
 0x2b4   : > { %970 = vperm.xlu1 %1903, %v2805_v21   ;;  %950 = vperm.xlu0 %1902, %v1941_v29   ;;  %v860_v29 = vmul.f32 %v2829_v40, %v844_v54 }
 0x2b8   : > { %980 = vperm.xlu1 %1903, %v2814_v60   ;;  %965 = vperm.xlu0 %1902, %v1945_v58   ;;  %v846_v58 = vld [vmem:[#allocation3 + $0x58] sm:$0xff]  ;;  %v859_v60 = vmul.f32 %v2820_v50, %v843_v55 }
 0x2bc   : > { %990 = vperm.xlu1 %1903, %v2820_v50   ;;  %975 = vperm.xlu0 %1902, %v1949_v2   ;;  %v861_v50 = vmul.f32 %v2826_v24, %v845_v62 }
 0x2c0   : > { %1000 = vperm.xlu1 %1903, %v2826_v24   ;;  %985 = vperm.xlu0 %1902, %v1953_v8   ;;  %v862_v8 = vmul.f32 %v2835_v36, %v846_v58 }
 0x2c4   : > { %1010 = vperm.xlu1 %1903, %v2831_v14   ;;  %995 = vperm.xlu0 %1902, %v2829_v40  }
 0x2c8   : > { %1020 = vperm.xlu1 %1903, %v2837_v9   ;;  %1005 = vperm.xlu0 %1902, %v2835_v36  }
 0x2cc   : > { %1015 = vperm.xlu0 %1902, %v2841_v42  }
 0x2d0   : > { %1025 = vperm.xlu0 %1902, %v2844_v28  }
 0x2fb   : > { %v868_v20 = vpop.xlane.xlu1 %867 }
 0x2fc   : > { %v899_v25 = vadd.f32 %v868_v20, %v851_v59  ;;  %v848_v20 = vld [vmem:[#allocation3 + $0x68] sm:$0xff] }
 0x2fd   : > { %v864_v36 = vmul.f32 %v2841_v42, %v848_v20 }
 0x2fe   : > { %916 = vst.msk [vmem:[#allocation3] sm:$0xff] %vm312_vm0, %v899_v25 }
 0x2ff   : > { %v870_v19 = vpop.xlane.xlu0 %869 }
 0x300   : > { %v900_v26 = vadd.f32 %v870_v19, %v852_v5 }
 0x302   : > { %917 = vst.msk [vmem:[#allocation3 + $0x8] sm:$0xff] %vm312_vm0, %v900_v26 }
 0x303   : > { %v874_v37 = vpop.xlane.xlu1 %873 }
 0x304   : > { %v902_v7 = vadd.f32 %v874_v37, %v854_v48  ;;  %v847_v48 = vld [vmem:[#allocation3 + $0x60] sm:$0xff] }
 0x305   : > { %v1256_v32 = vld [vmem:[#allocation3] sm:$0xff]  ;;  %v863_v24 = vmul.f32 %v2831_v14, %v847_v48  ;;  %v865_v14 = vmul.f32 %v2837_v9, %v849_v16 }
 0x306   : > { %919 = vst.msk [vmem:[#allocation3 + $0x18] sm:$0xff] %vm312_vm0, %v902_v7  ;;  %1968 = vrcp.f32 %v1256_v32 }
 0x307   : > { %v872_v57 = vpop.xlane.xlu0 %871 }
 0x308   : > { %v901_v45 = vadd.f32 %v872_v57, %v853_v52 }
 0x309   : > { %v1257_v22 = vld [vmem:[#allocation3 + $0x8] sm:$0xff] }
 0x30a   : > { %918 = vst.msk [vmem:[#allocation3 + $0x10] sm:$0xff] %vm312_vm0, %v901_v45  ;;  %1970 = vrcp.f32 %v1257_v22 }
 0x30b   : > { %v878_v18 = vpop.xlane.xlu1 %877 }
 0x30c   : > { %v904_v51 = vadd.f32 %v878_v18, %v856_v11 }
 0x30d   : > { %v1259_v61 = vld [vmem:[#allocation3 + $0x18] sm:$0xff] }
 0x30e   : > { %921 = vst.msk [vmem:[#allocation3 + $0x28] sm:$0xff] %vm312_vm0, %v904_v51  ;;  %1972 = vrcp.f32 %v1259_v61 }
 0x30f   : > { %v876_v63 = vpop.xlane.xlu0 %875 }
 0x310   : > { %v903_v4 = vadd.f32 %v876_v63, %v855_v3 }
 0x311   : > { %v1258_v44 = vld [vmem:[#allocation3 + $0x10] sm:$0xff] }
 0x312   : > { %920 = vst.msk [vmem:[#allocation3 + $0x20] sm:$0xff] %vm312_vm0, %v903_v4  ;;  %1974 = vrcp.f32 %v1258_v44 }
 0x313   : > { %v1969_v53 = vpop.eup %1968  ;;  %v882_v1 = vpop.xlane.xlu1 %881 }
 0x314   : > { %v906_v47 = vadd.f32 %v882_v1, %v858_v49  ;;  %v1288_v12 = vmul.f32 %v1969_v53, %v1256_v32  ;;  %v850_v32 = vld [vmem:[#allocation3 + $0x78] sm:$0xff] }
 0x315   : > { %v2854_v15 = vld [vmem:[#allocation3 + $0x28] sm:$0xff]  ;;  %v866_v42 = vmul.f32 %v2844_v28, %v850_v32 }
 0x316   : > { %923 = vst.msk [vmem:[#allocation3 + $0x38] sm:$0xff] %vm312_vm0, %v906_v47  ;;  %v1304_v6 = vsub.f32 2.0, %v1288_v12  ;;  %1976 = vrcp.f32 %v2854_v15 }
 0x317   : > { %v1971_v17 = vpop.eup %1970  ;;  %v880_v41 = vpop.xlane.xlu0 %879 }
 0x318   : > { %v886_v21 = vpop.xlane.xlu1 %885  ;;  %v905_v33 = vadd.f32 %v880_v41, %v857_v27  ;;  %v1320_v43 = vmul.f32 %v1969_v53, %v1304_v6  ;;  %v1289_v35 = vmul.f32 %v1971_v17, %v1257_v22 }
 0x319   : > { %v908_v46 = vadd.f32 %v886_v21, %v860_v29  ;;  %v2860_v2 = vld [vmem:[#allocation3 + $0x20] sm:$0xff] }
 0x31a   : > { %922 = vst.msk [vmem:[#allocation3 + $0x30] sm:$0xff] %vm312_vm0, %v905_v33  ;;  %1354 = vperm.xlu1 %1903, %v1320_v43   ;;  %v1305_v23 = vsub.f32 2.0, %v1289_v35  ;;  %1978 = vrcp.f32 %v2860_v2 }
 0x31b   : > { %v1973_v13 = vpop.eup %1972  ;;  %925 = vst.msk [vmem:[#allocation3 + $0x48] sm:$0xff] %vm312_vm0, %v908_v46  ;;  %v884_v31 = vpop.xlane.xlu0 %883 }
 0x31c   : > { %v890_v40 = vpop.xlane.xlu1 %889  ;;  %v907_v0 = vadd.f32 %v884_v31, %v859_v60  ;;  %v1321_v59 = vmul.f32 %v1971_v17, %v1305_v23  ;;  %v1291_v30 = vmul.f32 %v1973_v13, %v1259_v61 }
 0x31d   : > { %v910_v25 = vadd.f32 %v890_v40, %v862_v8  ;;  %v1263_v5 = vld [vmem:[#allocation3 + $0x38] sm:$0xff] }
 0x31e   : > { %924 = vst.msk [vmem:[#allocation3 + $0x40] sm:$0xff] %vm312_vm0, %v907_v0  ;;  %1359 = vperm.xlu0 %1902, %v1321_v59   ;;  %v1307_v19 = vsub.f32 2.0, %v1291_v30  ;;  %1980 = vrcp.f32 %v1263_v5 }
 0x31f   : > { %v1975_v34 = vpop.eup %1974  ;;  %927 = vst.msk [vmem:[#allocation3 + $0x58] sm:$0xff] %vm312_vm0, %v910_v25  ;;  %v888_v26 = vpop.xlane.xlu0 %887 }
 0x320   : > { %v894_v37 = vpop.xlane.xlu1 %893  ;;  %v909_v39 = vadd.f32 %v888_v26, %v861_v50  ;;  %v1323_v7 = vmul.f32 %v1973_v13, %v1307_v19  ;;  %v1290_v52 = vmul.f32 %v1975_v34, %v1258_v44 }
 0x321   : > { %v912_v57 = vadd.f32 %v894_v37, %v864_v36  ;;  %v1262_v38 = vld [vmem:[#allocation3 + $0x30] sm:$0xff] }
 0x322   : > { %926 = vst.msk [vmem:[#allocation3 + $0x50] sm:$0xff] %vm312_vm0, %v909_v39  ;;  %1369 = vperm.xlu0 %1902, %v1323_v7   ;;  %v1306_v45 = vsub.f32 2.0, %v1290_v52  ;;  %v1265_v22 = vld [vmem:[#allocation3 + $0x48] sm:$0xff]  ;;  %1982 = vrcp.f32 %v1262_v38 }
 0x323   : > { %v1977_v11 = vpop.eup %1976  ;;  %929 = vst.msk [vmem:[#allocation3 + $0x68] sm:$0xff] %vm312_vm0, %v912_v57  ;;  %v892_v18 = vpop.xlane.xlu0 %891  ;;  %1984 = vrcp.f32 %v1265_v22 }
 0x324   : > { %v898_v51 = vpop.xlane.xlu1 %897  ;;  %v911_v61 = vadd.f32 %v892_v18, %v863_v24  ;;  %v1322_v3 = vmul.f32 %v1975_v34, %v1306_v45  ;;  %v1293_v63 = vmul.f32 %v1977_v11, %v2854_v15 }
 0x325   : > { %v914_v56 = vadd.f32 %v898_v51, %v866_v42  ;;  %v1264_v4 = vld [vmem:[#allocation3 + $0x40] sm:$0xff] }
 0x326   : > { %928 = vst.msk [vmem:[#allocation3 + $0x60] sm:$0xff] %vm312_vm0, %v911_v61  ;;  %1364 = vperm.xlu1 %1903, %v1322_v3   ;;  %v1309_v44 = vsub.f32 2.0, %v1293_v63  ;;  %v1267_v49 = vld [vmem:[#allocation3 + $0x58] sm:$0xff]  ;;  %1986 = vrcp.f32 %v1264_v4 }
 0x327   : > { %v1979_v53 = vpop.eup %1978  ;;  %931 = vst.msk [vmem:[#allocation3 + $0x78] sm:$0xff] %vm312_vm0, %v914_v56  ;;  %v896_v28 = vpop.xlane.xlu0 %895  ;;  %1988 = vrcp.f32 %v1267_v49 }
 0x328   : > { %v913_v1 = vadd.f32 %v896_v28, %v865_v14  ;;  %v1325_v10 = vmul.f32 %v1977_v11, %v1309_v44  ;;  %v1292_v47 = vmul.f32 %v1979_v53, %v2860_v2  ;;  %v956_v42 = vpop.permute.xlu1 %955 }
 0x329   : > { %v1266_v54 = vld [vmem:[#allocation3 + $0x50] sm:$0xff] }
 0x32a   : > { %930 = vst.msk [vmem:[#allocation3 + $0x70] sm:$0xff] %vm312_vm0, %v913_v1  ;;  %1379 = vperm.xlu0 %1902, %v1325_v10   ;;  %v1308_v12 = vsub.f32 2.0, %v1292_v47  ;;  %v1269_v15 = vld [vmem:[#allocation3 + $0x68] sm:$0xff]  ;;  %1990 = vrcp.f32 %v1266_v54 }
 0x32b   : > { %v1981_v9 = vpop.eup %1980  ;;  %1992 = vrcp.f32 %v1269_v15 }
 0x32c   : > { %v1324_v27 = vmul.f32 %v1979_v53, %v1308_v12  ;;  %v1295_v6 = vmul.f32 %v1981_v9, %v1263_v5  ;;  %v961_v16 = vpop.permute.xlu1 %960 }
 0x32d   : > { %v1268_v17 = vld [vmem:[#allocation3 + $0x60] sm:$0xff] }
 0x32e   : > { %1374 = vperm.xlu1 %1903, %v1324_v27   ;;  %v1311_v29 = vsub.f32 2.0, %v1295_v6  ;;  %v1271_v41 = vld [vmem:[#allocation3 + $0x78] sm:$0xff]  ;;  %1994 = vrcp.f32 %v1268_v17 }
 0x32f   : > { %v1983_v55 = vpop.eup %1982  ;;  %1996 = vrcp.f32 %v1271_v41  ;;  %v951_v18 = vpop.permute.xlu0 %950 }
 0x330   : > { %v1985_v21 = vpop.eup %1984  ;;  %v1327_v33 = vmul.f32 %v1981_v9, %v1311_v29  ;;  %v1294_v43 = vmul.f32 %v1983_v55, %v1262_v38  ;;  %v971_v61 = vpop.permute.xlu1 %970  ;;  %v1029_v29 = vmul.f32 0.0, %v956_v42 }
 0x331   : > { %v1297_v58 = vmul.f32 %v1985_v21, %v1265_v22  ;;  %v1270_v35 = vld [vmem:[#allocation3 + $0x70] sm:$0xff] }
 0x332   : > { %1389 = vperm.xlu0 %1902, %v1327_v33   ;;  %v1310_v46 = vsub.f32 2.0, %v1294_v43  ;;  %1998 = vrcp.f32 %v1270_v35 }
 0x333   : > { %v1987_v2 = vpop.eup %1986  ;;  %v1313_v60 = vsub.f32 2.0, %v1297_v58  ;;  %v966_v51 = vpop.permute.xlu0 %965 }
 0x334   : > { %v1989_v23 = vpop.eup %1988  ;;  %v1326_v13 = vmul.f32 %v1983_v55, %v1310_v46  ;;  %v1296_v8 = vmul.f32 %v1987_v2, %v1264_v4  ;;  %v981_v63 = vpop.permute.xlu1 %980  ;;  %v1031_v58 = vmul.f32 0.0, %v966_v51 }
 0x335   : > { %v1329_v31 = vmul.f32 %v1985_v21, %v1313_v60  ;;  %v1299_v62 = vmul.f32 %v1989_v23, %v1267_v49 }
 0x336   : > { %1384 = vperm.xlu1 %1903, %v1326_v13   ;;  %v1312_v40 = vsub.f32 2.0, %v1296_v8  ;;  %v1800_v49 = vpop.f32.mrf.mxu1 }
 0x337   : > { %v1991_v0 = vpop.eup %1990  ;;  %1399 = vperm.xlu0 %1902, %v1329_v31   ;;  %v1315_v59 = vsub.f32 2.0, %v1299_v62  ;;  %v976_v3 = vpop.permute.xlu0 %975  ;;  %v1206_v21 = vadd.f32 %v1800_v49, %v1029_v29 }
 0x338   : > { %v1993_v20 = vpop.eup %1992  ;;  %v1328_v30 = vmul.f32 %v1987_v2, %v1312_v40  ;;  %v1298_v25 = vmul.f32 %v1991_v0, %v1266_v54  ;;  %v991_v4 = vpop.permute.xlu1 %990  ;;  %v1033_v40 = vmul.f32 0.0, %v976_v3 }
 0x339   : > { %v1331_v5 = vmul.f32 %v1989_v23, %v1315_v59  ;;  %v1301_v50 = vmul.f32 %v1993_v20, %v1269_v15  ;;  %v1126_v28 = vpop.f32.mrf.mxu1  ;;  %v1028_v15 = vmul.f32 0.0, %v951_v18  ;;  %v1030_v23 = vmul.f32 0.0, %v961_v16 }
 0x33a   : > { %1394 = vperm.xlu1 %1903, %v1328_v30   ;;  %v1314_v19 = vsub.f32 2.0, %v1298_v25  ;;  %v1032_v25 = vmul.f32 0.0, %v971_v61 }
 0x33b   : > { %v1995_v34 = vpop.eup %1994  ;;  %1409 = vperm.xlu0 %1902, %v1331_v5   ;;  %v1317_v36 = vsub.f32 2.0, %v1301_v50  ;;  %v986_v56 = vpop.permute.xlu0 %985  ;;  %v1205_v27 = vadd.f32 %v1126_v28, %v1028_v15 }
 0x33c   : > { %v1997_v26 = vpop.eup %1996  ;;  %v1330_v48 = vmul.f32 %v1991_v0, %v1314_v19  ;;  %v1300_v37 = vmul.f32 %v1995_v34, %v1268_v17  ;;  %v2881_v44 = vpop.permute.xlu1 %1000 }
 0x33d   : > { %v1333_v39 = vmul.f32 %v1993_v20, %v1317_v36  ;;  %v1303_v7 = vmul.f32 %v1997_v26, %v1271_v41  ;;  %v1035_v36 = vmul.f32 0.0, %v986_v56  ;;  %v1038_v56 = vmul.f32 0.0, %v2881_v44 }
 0x33e   : > { %1404 = vperm.xlu1 %1903, %v1330_v48   ;;  %v1316_v32 = vsub.f32 2.0, %v1300_v37 }
 0x33f   : > { %v1999_v52 = vpop.eup %1998  ;;  %1419 = vperm.xlu0 %1902, %v1333_v39   ;;  %v1319_v57 = vsub.f32 2.0, %v1303_v7  ;;  %v996_v14 = vpop.permute.xlu0 %995  ;;  %v1034_v7 = vmul.f32 0.0, %v981_v63 }
 0x340   : > { %v1332_v38 = vmul.f32 %v1995_v34, %v1316_v32  ;;  %v1302_v24 = vmul.f32 %v1999_v52, %v1270_v35  ;;  %v2883_v1 = vpop.permute.xlu1 %1010  ;;  %v1803_v10 = vpop.f32.mrf.mxu1 }
 0x341   : > { %v1335_v45 = vmul.f32 %v1997_v26, %v1319_v57  ;;  %v1208_v46 = vadd.f32 %v1803_v10, %v1031_v58 }
 0x342   : > { %1414 = vperm.xlu1 %1903, %v1332_v38   ;;  %v1318_v22 = vsub.f32 2.0, %v1302_v24  ;;  %v1136_v54 = vpop.f32.mrf.mxu1 }
 0x343   : > { %1429 = vperm.xlu0 %1902, %v1335_v45   ;;  %v1006_v53 = vpop.permute.xlu0 %1005  ;;  %v1207_v8 = vadd.f32 %v1136_v54, %v1030_v23 }
 0x344   : > { %v1334_v11 = vmul.f32 %v1999_v52, %v1318_v22  ;;  %v2887_v12 = vpop.permute.xlu1 %1020  ;;  %v1037_v52 = vmul.f32 0.0, %v996_v14  ;;  %v1036_v22 = vmul.f32 0.0, %v991_v4  ;;  %v1039_v18 = vmul.f32 0.0, %v1006_v53 }
 0x346   : > { %1424 = vperm.xlu1 %1903, %v1334_v11  }
 0x347   : > { %v2885_v47 = vpop.permute.xlu0 %1015  ;;  %v1806_v9 = vpop.f32.mrf.mxu1 }
 0x348   : > { %v1210_v59 = vadd.f32 %v1806_v9, %v1033_v40  ;;  %v1041_v28 = vmul.f32 0.0, %v2885_v47  ;;  %v1040_v9 = vmul.f32 0.0, %v2883_v1 }
 0x349   : > { %v1146_v55 = vpop.f32.mrf.mxu1 }
 0x34a   : > { %v1209_v50 = vadd.f32 %v1146_v55, %v1032_v25 }
 0x34b   : > { %v2889_v6 = vpop.permute.xlu0 %1025 }
 0x34c   : > { %v1043_v44 = vmul.f32 0.0, %v2889_v6 }
 0x34f   : > { %v1809_v33 = vpop.f32.mrf.mxu1 }
 0x350   : > { %v1212_v48 = vadd.f32 %v1809_v33, %v1035_v36  ;;  %v1042_v33 = vmul.f32 0.0, %v2887_v12 }
 0x351   : > { %v1156_v2 = vpop.f32.mrf.mxu1 }
 0x352   : > { %v1211_v57 = vadd.f32 %v1156_v2, %v1034_v7 }
 0x353   : > { %v1812_v31 = vpop.f32.mrf.mxu1 }
 0x354   : > { %v1214_v38 = vadd.f32 %v1812_v31, %v1037_v52 }
 0x355   : > { %v1166_v20 = vpop.f32.mrf.mxu1 }
 0x356   : > { %v1213_v51 = vadd.f32 %v1166_v20, %v1036_v22 }
 0x357   : > { %v1815_v19 = vpop.f32.mrf.mxu1 }
 0x358   : > { %v1216_v61 = vadd.f32 %v1815_v19, %v1039_v18 }
 0x359   : > { %v1176_v37 = vpop.f32.mrf.mxu1 }
 0x35a   : > { %v1215_v10 = vadd.f32 %v1176_v37, %v1038_v56 }
 0x35b   : > { %v1818_v24 = vpop.f32.mrf.mxu1 }
 0x35c   : > { %v1218_v53 = vadd.f32 %v1818_v24, %v1041_v28 }
 0x35d   : > { %v1186_v3 = vpop.f32.mrf.mxu1 }
 0x35e   : > { %v1217_v47 = vadd.f32 %v1186_v3, %v1040_v9 }
 0x35f   : > { %v1821_v54 = vpop.f32.mrf.mxu1 }
 0x361   : > { %v1196_v55 = vpop.f32.mrf.mxu1 }
 0x395   : > { %v1355_v17 = vpop.permute.xlu1 %1354 }
 0x396   : > { %v1432_v41 = vmul.f32 %v1355_v17, %v1205_v27 }
 0x398   : > { %1448 = vst [vmem:[%s2892_s11] sm:$0xff] %v1432_v41  ;;  %v1220_v41 = vadd.f32 %v1821_v54, %v1043_v44 }
 0x399   : > { %v1360_v43 = vpop.permute.xlu0 %1359 }
 0x39a   : > { %v1433_v35 = vmul.f32 %v1360_v43, %v1206_v21 }
 0x39c   : > { %1449 = vst [vmem:[%s2892_s11 + $0x8] sm:$0xff] %v1433_v35  ;;  %v1219_v35 = vadd.f32 %v1196_v55, %v1042_v33 }
 0x39d   : > { %v1370_v60 = vpop.permute.xlu0 %1369 }
 0x39e   : > { %v1435_v13 = vmul.f32 %v1370_v60, %v1208_v46 }
 0x3a0   : > { %1451 = vst [vmem:[%s2892_s11 + $0x18] sm:$0xff] %v1435_v13 }
 0x3a1   : > { %v1365_v62 = vpop.permute.xlu1 %1364 }
 0x3a2   : > { %v1434_v0 = vmul.f32 %v1365_v62, %v1207_v8 }
 0x3a4   : > { %1450 = vst [vmem:[%s2892_s11 + $0x10] sm:$0xff] %v1434_v0 }
 0x3a5   : > { %v1380_v30 = vpop.permute.xlu0 %1379 }
 0x3a6   : > { %v1437_v5 = vmul.f32 %v1380_v30, %v1210_v59 }
 0x3a8   : > { %1453 = vst [vmem:[%s2892_s11 + $0x28] sm:$0xff] %v1437_v5 }
 0x3a9   : > { %v1375_v34 = vpop.permute.xlu1 %1374 }
 0x3aa   : > { %v1436_v26 = vmul.f32 %v1375_v34, %v1209_v50 }
 0x3ac   : > { %1452 = vst [vmem:[%s2892_s11 + $0x20] sm:$0xff] %v1436_v26 }
 0x3ad   : > { %v1390_v39 = vpop.permute.xlu0 %1389 }
 0x3ae   : > { %v1439_v32 = vmul.f32 %v1390_v39, %v1212_v48 }
 0x3b0   : > { %1455 = vst [vmem:[%s2892_s11 + $0x38] sm:$0xff] %v1439_v32 }
 0x3b1   : > { %v1385_v45 = vpop.permute.xlu1 %1384 }
 0x3b2   : > { %v1400_v11 = vpop.permute.xlu0 %1399  ;;  %v1438_v42 = vmul.f32 %v1385_v45, %v1211_v57 }
 0x3b3   : > { %v1441_v16 = vmul.f32 %v1400_v11, %v1214_v38 }
 0x3b4   : > { %1454 = vst [vmem:[%s2892_s11 + $0x30] sm:$0xff] %v1438_v42 }
 0x3b5   : > { %1457 = vst [vmem:[%s2892_s11 + $0x48] sm:$0xff] %v1441_v16  ;;  %v1395_v63 = vpop.permute.xlu1 %1394 }
 0x3b6   : > { %v1410_v14 = vpop.permute.xlu0 %1409  ;;  %v1440_v49 = vmul.f32 %v1395_v63, %v1213_v51 }
 0x3b7   : > { %v1443_v4 = vmul.f32 %v1410_v14, %v1216_v61 }
 0x3b8   : > { %1456 = vst [vmem:[%s2892_s11 + $0x40] sm:$0xff] %v1440_v49 }
 0x3b9   : > { %1459 = vst [vmem:[%s2892_s11 + $0x58] sm:$0xff] %v1443_v4  ;;  %v1405_v15 = vpop.permute.xlu1 %1404 }
 0x3ba   : > { %v1420_v27 = vpop.permute.xlu0 %1419  ;;  %v1442_v17 = vmul.f32 %v1405_v15, %v1215_v10 }
 0x3bb   : > { %v1445_v29 = vmul.f32 %v1420_v27, %v1218_v53 }
 0x3bc   : > { %1458 = vst [vmem:[%s2892_s11 + $0x50] sm:$0xff] %v1442_v17 }
 0x3bd   : > { %1461 = vst [vmem:[%s2892_s11 + $0x68] sm:$0xff] %v1445_v29  ;;  %v1415_v21 = vpop.permute.xlu1 %1414 }
 0x3be   : > { %v1430_v43 = vpop.permute.xlu0 %1429  ;;  %v1444_v1 = vmul.f32 %v1415_v21, %v1217_v47 }
 0x3bf   : > { %v1447_v58 = vmul.f32 %v1430_v43, %v1220_v41 }
 0x3c0   : > { %1460 = vst [vmem:[%s2892_s11 + $0x60] sm:$0xff] %v1444_v1 }
 0x3c1   : > { %1463 = vst [vmem:[%s2892_s11 + $0x78] sm:$0xff] %v1447_v58  ;;  %v1425_v6 = vpop.permute.xlu1 %1424 }
 0x3c2   : > { %v1446_v12 = vmul.f32 %v1425_v6, %v1219_v35 }
 0x3c4   : > { %1462 = vst [vmem:[%s2892_s11 + $0x70] sm:$0xff] %v1446_v12 }
 0x3c5   : > { %2105 = shalt.err (!%p2102_p12)
}
 0x3c6   : > { %s2106_s5 = scalar_lea.hbm %s2919_s7, 2048  ;;  %s2110_s28 = scalar_lea.hbm %s2974_s4, 4096 }
 0x3c7   : > { %p2107_p1 = scmp.ne.s32.totalorder %s2919_s7, %s2106_s5  ;;  %p2111_p6 = scmp.lt.s32.totalorder %s2919_s7, %s2974_s4 }
 0x3c8   : > { %p2112_p7 = scmp.lt.s32.totalorder %s2110_s28, %s2106_s5 }
 0x3c9   : > { %p2108_p2 = pnand %p2107_p1, %p2275_p9 }
 0x3ca   : > { %p2113_p8 = por %p2112_p7, %p2111_p6 }
 0x3cb   : > { %p2109_p5 = pneg %p2108_p2 }
 0x3cd   : > { %p2114_p0 = pnand %p2113_p8, %p2109_p5 }
 0x3cf   : > { %2117 = shalt.err (!%p2114_p0)
}
 0x3d0   : > { %s2190_s9 = smov 128   ;;  %s2191_s17 = smov 8  }
 0x3d1   : > { %1828 = dma.vmem_to_hbm [thread:$0]  (%p2275_p9), %s2921_s15, 2048, %s2919_s7, %s1465_s24, %s2190_s9, %s2190_s9, %s2191_s17  }
 0x3d2 PF: > { %s1495_s23 = sand.u32 1, %s2158_s18   ;;  %p3008_p3 = scmp.ge.s32.totalorder %s2178_s0, 2 }
 0x3d3   : > { %s1496_s29 = scalar_lea.sflag [#allocation9], %s1495_s23 }
 0x3d4   : > { %p1841_p4 = pnand %p3008_p3, %p2282_p11 }
 0x3d6   : > { %p1842_p10 = pneg %p1841_p4 }
 0x3d8   : > { %2153 = dma.done.wait (%p1842_p10), %s1496_s29, 2048  }
 0x3d9   : > { %2155 = vsyncadd (%p1842_p10), %s1496_s29, 4294965248  ;;  %s27_s0 = sadd.s32 1, %s2178_s0   ;;  %s3009_s30 = sld [smem:[#allocation20_spill]] }
 0x3da   : > { %p24_p13 = scmp.ge.s32.totalorder %s27_s0, 4   ;;  %s3010_s21 = sld [smem:[#allocation18_spill]] }
 0x3db   : > { %s3011_s22 = sld [smem:[#allocation19_spill]]  ;;  %s3012_s18 = smov %s2162_s19 }
 0x3dc   : > { %s3013_s19 = smov %s2166_s20  ;;  %26 = sbr.rel (!%p24_p13) target bundleno = 14 (0xe), region = 109 }
 0x3df   : > { %s3014_s20 = smov %s3009_s30 }
 0x3e1   :  { %1501 = vsyncpa [#allocation8], 1 }
 0x3e2   :  { %1503 = vsyncpa [#allocation8 + $0x1], 1 }
 0x3e3   :  { %1504 = vsyncpa [#allocation11], 1 }
 0x3e4   :  { %1506 = vsyncpa [#allocation11 + $0x1], 1 }
 0x3e5   :  { %1507 = vsyncpa [#allocation9], 1 }
 0x3e6   :  { %1509 = vsyncpa [#allocation9 + $0x1], 1 }

</bundles_post_ra>
